<compile_context>
chip_gen: v5e
topology: v5e:2x2
jax: 0.10.0
libtpu: 0.0.40
codegen_flags: <defaults>
</compile_context>

<pallas_src>
import jax
import jax.numpy as jnp
from jax.experimental import pallas as pl
from jax.experimental.pallas import tpu as pltpu


def _round_up(n, m):
    return ((n + m - 1) // m) * m


def dpcnn_kernel(emb_ref, wr_ref, br_ref, wc_ref, bc_ref, wf_ref, bf_ref,
                 out_ref, pool_buf):
    f32 = jnp.float32
    bt, seq_len, _ = emb_ref.shape
    nfp = wc_ref.shape[-1]

    def fold(x):                          # (bt, H, K) -> (bt*H, K)
        if bt == 1:
            return x[0]
        return jnp.concatenate([x[i] for i in range(bt)], axis=0)

    def unfold(y, h):                     # (bt*h, C) -> (bt, h, C)
        if bt == 1:
            return y[None]
        return jnp.stack([y[i * h:(i + 1) * h] for i in range(bt)], axis=0)

    def mm(x3d, w_ref, b_ref):            # fused-tap conv matmul, f32 accumulate
        h = x3d.shape[1]
        x2 = fold(x3d).astype(w_ref.dtype)
        y = jnp.dot(x2, w_ref[...], preferred_element_type=f32) + b_ref[...]
        return unfold(y, h)

    zrow = jnp.zeros((bt, 1, nfp), f32)

    def pad1_relu_conv(v):
        # ZeroPad2d((0,0,1,1)) -> ReLU -> Conv2d(NF, NF, (3,1)); length-preserving.
        h = v.shape[1]
        vp = jnp.concatenate([zrow, jnp.maximum(v, 0.0), zrow], axis=1)   # (bt,h+2,NFp)
        v3 = jnp.concatenate([vp[:, 0:h], vp[:, 1:h + 1], vp[:, 2:h + 2]], axis=-1)
        return mm(v3, wc_ref, bc_ref)

    # ---- conv_region: Conv2d(1, NF, (3, E)) ----  (bt, L, E) -> (bt, T, NFp)
    T = seq_len - 2
    x = emb_ref[...]
    x3 = jnp.concatenate([x[:, 0:T], x[:, 1:T + 1], x[:, 2:T + 2]], axis=-1)
    h = mm(x3, wr_ref, br_ref)

    h = pad1_relu_conv(h)
    h = pad1_relu_conv(h)

    # ---- repeated DPCNN downsampling blocks (static shapes -> unrolled) ----
    H = T
    while H > 2:
        H_out = (H - 2) // 2 + 1
        # padding2 (one zero row at bottom) + MaxPool2d((3,1), stride=2)
        hp = jnp.concatenate([h, zrow], axis=1)                   # (bt, H+1, NFp)
        m3 = jnp.maximum(jnp.maximum(hp[:, 0:H - 1], hp[:, 1:H]), hp[:, 2:H + 1])
        pool_buf[:, 0:H - 1, :] = m3
        px = pool_buf[:, pl.ds(0, H_out, stride=2), :]            # stride-2 subsample
        v = pad1_relu_conv(px)
        v = pad1_relu_conv(v)
        h = v + px
        H = H_out

    # ---- squeeze (H == 1 here) + fc ----
    h2 = fold(h).astype(wf_ref.dtype)                             # (bt, NFp)
    out = jnp.dot(h2, wf_ref[...], preferred_element_type=f32) + bf_ref[...]
    out_ref[...] = out.astype(out_ref.dtype)


def dpcnn_forward(input_ids, params, *, block_batch=8, matmul_dtype=jnp.bfloat16):
    emb_mat = params["embedding"]
    B, L = input_ids.shape
    E = emb_mat.shape[1]
    NF = params["b_conv"].shape[0]
    NC = params["b_fc"].shape[0]
    NFp = _round_up(NF, 128)      # lane-dense channels (256 for realistic NF~250)
    NCp = _round_up(NC, 128)

    # torch's `while x.size(2) > 2` must terminate at H == 1 for .squeeze()+fc
    H = L - 2
    while H > 2:
        H = (H - 2) // 2 + 1
    assert H == 1, "choose seq_len so the DPCNN pyramid collapses to height 1"

    BT = min(block_batch, B)
    while B % BT:
        BT -= 1
    G = B // BT

    f32 = jnp.float32
    # glue: embedding gather + fused / zero-padded weight re-layout
    emb = emb_mat[input_ids].astype(matmul_dtype)                       # (B, L, E)

    wr0 = jnp.transpose(params["w_region"][:, 0, :, :], (1, 2, 0))      # (3, E, NF)
    wr_f = (jnp.zeros((3, E, NFp), matmul_dtype)
            .at[:, :, :NF].set(wr0.astype(matmul_dtype)).reshape(3 * E, NFp))
    wc0 = jnp.transpose(params["w_conv"][:, :, :, 0], (2, 1, 0))        # (3, NF, NF)
    wc_f = (jnp.zeros((3, NFp, NFp), matmul_dtype)
            .at[:, :NF, :NF].set(wc0.astype(matmul_dtype)).reshape(3 * NFp, NFp))
    wf_f = (jnp.zeros((NFp, NCp), matmul_dtype)
            .at[:NF, :NC].set(params["w_fc"].T.astype(matmul_dtype)))
    br = jnp.zeros((1, NFp), f32).at[:, :NF].set(params["b_region"].astype(f32))
    bc = jnp.zeros((1, NFp), f32).at[:, :NF].set(params["b_conv"].astype(f32))
    bf = jnp.zeros((1, NCp), f32).at[:, :NC].set(params["b_fc"].astype(f32))

    out = pl.pallas_call(
        dpcnn_kernel,
        out_shape=jax.ShapeDtypeStruct((G, BT, NCp), jnp.float32),
        grid=(G,),
        in_specs=[
            pl.BlockSpec((BT, L, E), lambda g: (g, 0, 0)),      # embeddings (batch block)
            pl.BlockSpec((3 * E, NFp), lambda g: (0, 0)),       # fused conv_region weights
            pl.BlockSpec((1, NFp), lambda g: (0, 0)),           # conv_region bias
            pl.BlockSpec((3 * NFp, NFp), lambda g: (0, 0)),     # fused conv weights
            pl.BlockSpec((1, NFp), lambda g: (0, 0)),           # conv bias
            pl.BlockSpec((NFp, NCp), lambda g: (0, 0)),         # fc weight
            pl.BlockSpec((1, NCp), lambda g: (0, 0)),           # fc bias
        ],
        out_specs=pl.BlockSpec((None, BT, NCp), lambda g: (g, 0, 0)),
        scratch_shapes=[pltpu.VMEM((BT, L, NFp), jnp.float32)],
        compiler_params=pltpu.CompilerParams(
            dimension_semantics=("parallel",),                  # batch axis is independent
            vmem_limit_bytes=32 * 1024 * 1024),
    )(emb, wr_f, br, wc_f, bc, wf_f, bf)
    return out.reshape(B, NCp)[:, :NC]


def dpcnn_reference(input_ids, params, matmul_dtype=jnp.float32):
    """Plain-JAX reference mirroring the torch forward.  `matmul_dtype` lets it
    also mirror the kernel's mixed precision (bf16 matmul operands, f32
    accumulation); with float32 it is the exact torch math."""
    f32 = jnp.float32
    cast = lambda a: a.astype(matmul_dtype)
    emb = params["embedding"][input_ids].astype(f32)
    wr = jnp.transpose(params["w_region"][:, 0, :, :], (1, 2, 0))
    wc = jnp.transpose(params["w_conv"][:, :, :, 0], (2, 1, 0))

    def conv_k3(x, w, b):                     # x (B,H,C), w (3,C,F)
        T = x.shape[1] - 2
        out = b.astype(f32)
        for dt in range(3):
            out = out + jnp.einsum("btc,cf->btf", cast(x[:, dt:dt + T, :]),
                                   cast(w[dt]), preferred_element_type=f32)
        return out

    pad_tb = lambda x: jnp.pad(x, ((0, 0), (1, 1), (0, 0)))
    pad_b = lambda x: jnp.pad(x, ((0, 0), (0, 1), (0, 0)))

    def maxpool(x):                           # kernel (3,1), stride 2
        Hp = x.shape[1]
        Ho = (Hp - 3) // 2 + 1
        return jnp.stack([jnp.max(x[:, 2 * j:2 * j + 3, :], axis=1)
                          for j in range(Ho)], axis=1)

    x = conv_k3(emb, wr, params["b_region"])
    x = conv_k3(jax.nn.relu(pad_tb(x)), wc, params["b_conv"])
    x = conv_k3(jax.nn.relu(pad_tb(x)), wc, params["b_conv"])
    while x.shape[1] > 2:
        px = maxpool(pad_b(x))
        v = conv_k3(jax.nn.relu(pad_tb(px)), wc, params["b_conv"])
        v = conv_k3(jax.nn.relu(pad_tb(v)), wc, params["b_conv"])
        x = v + px
    x = x[:, 0, :]
    return (jnp.einsum("bc,cf->bf", cast(x), cast(params["w_fc"].T),
                       preferred_element_type=f32) + params["b_fc"])


if __name__ == "__main__":
    B, L, V, E, NF, NC = 8, 16, 50, 32, 16, 4   # batch, seq, vocab, embed, filters, classes
    BT = 4                                       # batch elements per grid step

    key = jax.random.PRNGKey(0)
    ks = jax.random.split(key, 8)
    params = {
        "embedding": jax.random.normal(ks[0], (V, E), jnp.float32) * 0.5,
        "w_region": jax.random.normal(ks[1], (NF, 1, 3, E), jnp.float32) * 0.2,
        "b_region": jax.random.normal(ks[2], (NF,), jnp.float32) * 0.1,
        "w_conv": jax.random.normal(ks[3], (NF, NF, 3, 1), jnp.float32) * 0.2,
        "b_conv": jax.random.normal(ks[4], (NF,), jnp.float32) * 0.1,
        "w_fc": jax.random.normal(ks[5], (NC, NF), jnp.float32) * 0.2,
        "b_fc": jax.random.normal(ks[6], (NC,), jnp.float32) * 0.1,
    }
    input_ids = jax.random.randint(ks[7], (B, L), 0, V)

    # bf16 matmul operands (default, v6e/v7x-friendly) vs matching-precision ref.
    out = jax.block_until_ready(
        dpcnn_forward(input_ids, params, block_batch=BT, matmul_dtype=jnp.bfloat16))
    assert out.shape == (B, NC), out.shape
    ref = dpcnn_reference(input_ids, params, matmul_dtype=jnp.bfloat16)
    if not jnp.allclose(out, ref, atol=2e-2, rtol=2e-2):
        raise AssertionError(f"bf16 mismatch:\nkernel={out}\nref={ref}")

    # Full-f32 run against the exact torch-math reference.
    out32 = jax.block_until_ready(
        dpcnn_forward(input_ids, params, block_batch=BT, matmul_dtype=jnp.float32))
    ref32 = dpcnn_reference(input_ids, params, matmul_dtype=jnp.float32)
    if not jnp.allclose(out32, ref32, atol=5e-2, rtol=5e-2):
        raise AssertionError(f"f32 mismatch:\nkernel={out32}\nref={ref32}")

    print("KERNEL_OK")
</pallas_src>

<mosaic_0001>
module attributes {stable_mosaic.version = 11 : i64} {
  func.func @dpcnn_kernel(%arg0: i32, %arg1: memref<4x16x32xbf16, #tpu.memory_space<vmem>>, %arg2: memref<96x128xbf16, #tpu.memory_space<vmem>>, %arg3: memref<1x128xf32, #tpu.memory_space<vmem>>, %arg4: memref<384x128xbf16, #tpu.memory_space<vmem>>, %arg5: memref<1x128xf32, #tpu.memory_space<vmem>>, %arg6: memref<128x128xbf16, #tpu.memory_space<vmem>>, %arg7: memref<1x128xf32, #tpu.memory_space<vmem>>, %arg8: memref<1x4x128xf32, #tpu.memory_space<vmem>>, %arg9: memref<4x16x128xf32, #tpu.memory_space<vmem>>) attributes {dimension_semantics = [#tpu.dimension_semantics<parallel>], iteration_bounds = array<i64: 2>, scalar_prefetch = 0 : i64, scratch_operands = 1 : i64, tpu.core_type = #tpu.core_type<tc>, window_params = [{transform_indices = @transform_0, window_bounds = array<i64: 4, 16, 32>}, {pipeline_mode = #tpu.pipeline_mode<synchronous>, transform_indices = @transform_1, window_bounds = array<i64: 96, 128>}, {pipeline_mode = #tpu.pipeline_mode<synchronous>, transform_indices = @transform_2, window_bounds = array<i64: 1, 128>}, {pipeline_mode = #tpu.pipeline_mode<synchronous>, transform_indices = @transform_3, window_bounds = array<i64: 384, 128>}, {pipeline_mode = #tpu.pipeline_mode<synchronous>, transform_indices = @transform_4, window_bounds = array<i64: 1, 128>}, {pipeline_mode = #tpu.pipeline_mode<synchronous>, transform_indices = @transform_5, window_bounds = array<i64: 128, 128>}, {pipeline_mode = #tpu.pipeline_mode<synchronous>, transform_indices = @transform_6, window_bounds = array<i64: 1, 128>}, {transform_indices = @transform_7, window_bounds = array<i64: 1, 4, 128>}]} {
    %cst = arith.constant 0.000000e+00 : f32
    %0 = vector.broadcast %cst : f32 to vector<4x1x128xf32>
    %c0 = arith.constant 0 : index
    %c0_0 = arith.constant 0 : index
    %c0_1 = arith.constant 0 : index
    %1 = vector.load %arg1[%c0, %c0_0, %c0_1] : memref<4x16x32xbf16, #tpu.memory_space<vmem>>, vector<4x16x32xbf16>
    %2 = vector.extract_strided_slice %1 {offsets = [0, 0, 0], sizes = [4, 14, 32], strides = [1, 1, 1]} : vector<4x16x32xbf16> to vector<4x14x32xbf16>
    %3 = vector.extract_strided_slice %1 {offsets = [0, 1, 0], sizes = [4, 14, 32], strides = [1, 1, 1]} : vector<4x16x32xbf16> to vector<4x14x32xbf16>
    %4 = vector.extract_strided_slice %1 {offsets = [0, 2, 0], sizes = [4, 14, 32], strides = [1, 1, 1]} : vector<4x16x32xbf16> to vector<4x14x32xbf16>
    %5 = tpu.concatenate %2, %3, %4 in 2 : vector<4x14x32xbf16>, vector<4x14x32xbf16>, vector<4x14x32xbf16> -> vector<4x14x96xbf16>
    %6 = vector.extract_strided_slice %5 {offsets = [0, 0, 0], sizes = [1, 14, 96], strides = [1, 1, 1]} : vector<4x14x96xbf16> to vector<1x14x96xbf16>
    %7 = vector.shape_cast %6 : vector<1x14x96xbf16> to vector<14x96xbf16>
    %8 = vector.extract_strided_slice %5 {offsets = [1, 0, 0], sizes = [1, 14, 96], strides = [1, 1, 1]} : vector<4x14x96xbf16> to vector<1x14x96xbf16>
    %9 = vector.shape_cast %8 : vector<1x14x96xbf16> to vector<14x96xbf16>
    %10 = vector.extract_strided_slice %5 {offsets = [2, 0, 0], sizes = [1, 14, 96], strides = [1, 1, 1]} : vector<4x14x96xbf16> to vector<1x14x96xbf16>
    %11 = vector.shape_cast %10 : vector<1x14x96xbf16> to vector<14x96xbf16>
    %12 = vector.extract_strided_slice %5 {offsets = [3, 0, 0], sizes = [1, 14, 96], strides = [1, 1, 1]} : vector<4x14x96xbf16> to vector<1x14x96xbf16>
    %13 = vector.shape_cast %12 : vector<1x14x96xbf16> to vector<14x96xbf16>
    %14 = tpu.concatenate %7, %9, %11, %13 in 0 : vector<14x96xbf16>, vector<14x96xbf16>, vector<14x96xbf16>, vector<14x96xbf16> -> vector<56x96xbf16>
    %c0_2 = arith.constant 0 : index
    %c0_3 = arith.constant 0 : index
    %15 = vector.load %arg2[%c0_2, %c0_3] : memref<96x128xbf16, #tpu.memory_space<vmem>>, vector<96x128xbf16>
    %cst_4 = arith.constant dense<0.000000e+00> : vector<56x128xf32>
    %16 = tpu.matmul %14, %15, %cst_4 {dimension_numbers = #tpu.dot_dimension_numbers<[1], [0], [0], [1], [0, 0, 1, 1], [], []>} : vector<56x96xbf16>, vector<96x128xbf16>, vector<56x128xf32> -> vector<56x128xf32>
    %c0_5 = arith.constant 0 : index
    %c0_6 = arith.constant 0 : index
    %17 = vector.load %arg3[%c0_5, %c0_6] : memref<1x128xf32, #tpu.memory_space<vmem>>, vector<1x128xf32>
    %18 = vector.broadcast %17 : vector<1x128xf32> to vector<56x128xf32>
    %19 = arith.addf %16, %18 : vector<56x128xf32>
    %20 = vector.extract_strided_slice %19 {offsets = [0, 0], sizes = [14, 128], strides = [1, 1]} : vector<56x128xf32> to vector<14x128xf32>
    %21 = vector.extract_strided_slice %19 {offsets = [14, 0], sizes = [14, 128], strides = [1, 1]} : vector<56x128xf32> to vector<14x128xf32>
    %22 = vector.extract_strided_slice %19 {offsets = [28, 0], sizes = [14, 128], strides = [1, 1]} : vector<56x128xf32> to vector<14x128xf32>
    %23 = vector.extract_strided_slice %19 {offsets = [42, 0], sizes = [14, 128], strides = [1, 1]} : vector<56x128xf32> to vector<14x128xf32>
    %24 = vector.shape_cast %20 : vector<14x128xf32> to vector<1x14x128xf32>
    %25 = vector.shape_cast %21 : vector<14x128xf32> to vector<1x14x128xf32>
    %26 = vector.shape_cast %22 : vector<14x128xf32> to vector<1x14x128xf32>
    %27 = vector.shape_cast %23 : vector<14x128xf32> to vector<1x14x128xf32>
    %28 = tpu.concatenate %24, %25, %26, %27 in 0 : vector<1x14x128xf32>, vector<1x14x128xf32>, vector<1x14x128xf32>, vector<1x14x128xf32> -> vector<4x14x128xf32>
    %cst_7 = arith.constant 0.000000e+00 : f32
    %29 = vector.broadcast %cst_7 : f32 to vector<4x14x128xf32>
    %30 = arith.maximumf %28, %29 : vector<4x14x128xf32>
    %31 = tpu.concatenate %0, %30, %0 in 1 : vector<4x1x128xf32>, vector<4x14x128xf32>, vector<4x1x128xf32> -> vector<4x16x128xf32>
    %32 = vector.extract_strided_slice %31 {offsets = [0, 0, 0], sizes = [4, 14, 128], strides = [1, 1, 1]} : vector<4x16x128xf32> to vector<4x14x128xf32>
    %33 = vector.extract_strided_slice %31 {offsets = [0, 1, 0], sizes = [4, 14, 128], strides = [1, 1, 1]} : vector<4x16x128xf32> to vector<4x14x128xf32>
    %34 = vector.extract_strided_slice %31 {offsets = [0, 2, 0], sizes = [4, 14, 128], strides = [1, 1, 1]} : vector<4x16x128xf32> to vector<4x14x128xf32>
    %35 = tpu.concatenate %32, %33, %34 in 2 : vector<4x14x128xf32>, vector<4x14x128xf32>, vector<4x14x128xf32> -> vector<4x14x384xf32>
    %36 = vector.extract_strided_slice %35 {offsets = [0, 0, 0], sizes = [1, 14, 384], strides = [1, 1, 1]} : vector<4x14x384xf32> to vector<1x14x384xf32>
    %37 = vector.shape_cast %36 : vector<1x14x384xf32> to vector<14x384xf32>
    %38 = vector.extract_strided_slice %35 {offsets = [1, 0, 0], sizes = [1, 14, 384], strides = [1, 1, 1]} : vector<4x14x384xf32> to vector<1x14x384xf32>
    %39 = vector.shape_cast %38 : vector<1x14x384xf32> to vector<14x384xf32>
    %40 = vector.extract_strided_slice %35 {offsets = [2, 0, 0], sizes = [1, 14, 384], strides = [1, 1, 1]} : vector<4x14x384xf32> to vector<1x14x384xf32>
    %41 = vector.shape_cast %40 : vector<1x14x384xf32> to vector<14x384xf32>
    %42 = vector.extract_strided_slice %35 {offsets = [3, 0, 0], sizes = [1, 14, 384], strides = [1, 1, 1]} : vector<4x14x384xf32> to vector<1x14x384xf32>
    %43 = vector.shape_cast %42 : vector<1x14x384xf32> to vector<14x384xf32>
    %44 = tpu.concatenate %37, %39, %41, %43 in 0 : vector<14x384xf32>, vector<14x384xf32>, vector<14x384xf32>, vector<14x384xf32> -> vector<56x384xf32>
    %45 = arith.truncf %44 : vector<56x384xf32> to vector<56x384xbf16>
    %c0_8 = arith.constant 0 : index
    %c0_9 = arith.constant 0 : index
    %46 = vector.load %arg4[%c0_8, %c0_9] : memref<384x128xbf16, #tpu.memory_space<vmem>>, vector<384x128xbf16>
    %cst_10 = arith.constant dense<0.000000e+00> : vector<56x128xf32>
    %47 = tpu.matmul %45, %46, %cst_10 {dimension_numbers = #tpu.dot_dimension_numbers<[1], [0], [0], [1], [0, 0, 1, 1], [], []>} : vector<56x384xbf16>, vector<384x128xbf16>, vector<56x128xf32> -> vector<56x128xf32>
    %c0_11 = arith.constant 0 : index
    %c0_12 = arith.constant 0 : index
    %48 = vector.load %arg5[%c0_11, %c0_12] : memref<1x128xf32, #tpu.memory_space<vmem>>, vector<1x128xf32>
    %49 = vector.broadcast %48 : vector<1x128xf32> to vector<56x128xf32>
    %50 = arith.addf %47, %49 : vector<56x128xf32>
    %51 = vector.extract_strided_slice %50 {offsets = [0, 0], sizes = [14, 128], strides = [1, 1]} : vector<56x128xf32> to vector<14x128xf32>
    %52 = vector.extract_strided_slice %50 {offsets = [14, 0], sizes = [14, 128], strides = [1, 1]} : vector<56x128xf32> to vector<14x128xf32>
    %53 = vector.extract_strided_slice %50 {offsets = [28, 0], sizes = [14, 128], strides = [1, 1]} : vector<56x128xf32> to vector<14x128xf32>
    %54 = vector.extract_strided_slice %50 {offsets = [42, 0], sizes = [14, 128], strides = [1, 1]} : vector<56x128xf32> to vector<14x128xf32>
    %55 = vector.shape_cast %51 : vector<14x128xf32> to vector<1x14x128xf32>
    %56 = vector.shape_cast %52 : vector<14x128xf32> to vector<1x14x128xf32>
    %57 = vector.shape_cast %53 : vector<14x128xf32> to vector<1x14x128xf32>
    %58 = vector.shape_cast %54 : vector<14x128xf32> to vector<1x14x128xf32>
    %59 = tpu.concatenate %55, %56, %57, %58 in 0 : vector<1x14x128xf32>, vector<1x14x128xf32>, vector<1x14x128xf32>, vector<1x14x128xf32> -> vector<4x14x128xf32>
    %cst_13 = arith.constant 0.000000e+00 : f32
    %60 = vector.broadcast %cst_13 : f32 to vector<4x14x128xf32>
    %61 = arith.maximumf %59, %60 : vector<4x14x128xf32>
    %62 = tpu.concatenate %0, %61, %0 in 1 : vector<4x1x128xf32>, vector<4x14x128xf32>, vector<4x1x128xf32> -> vector<4x16x128xf32>
    %63 = vector.extract_strided_slice %62 {offsets = [0, 0, 0], sizes = [4, 14, 128], strides = [1, 1, 1]} : vector<4x16x128xf32> to vector<4x14x128xf32>
    %64 = vector.extract_strided_slice %62 {offsets = [0, 1, 0], sizes = [4, 14, 128], strides = [1, 1, 1]} : vector<4x16x128xf32> to vector<4x14x128xf32>
    %65 = vector.extract_strided_slice %62 {offsets = [0, 2, 0], sizes = [4, 14, 128], strides = [1, 1, 1]} : vector<4x16x128xf32> to vector<4x14x128xf32>
    %66 = tpu.concatenate %63, %64, %65 in 2 : vector<4x14x128xf32>, vector<4x14x128xf32>, vector<4x14x128xf32> -> vector<4x14x384xf32>
    %67 = vector.extract_strided_slice %66 {offsets = [0, 0, 0], sizes = [1, 14, 384], strides = [1, 1, 1]} : vector<4x14x384xf32> to vector<1x14x384xf32>
    %68 = vector.shape_cast %67 : vector<1x14x384xf32> to vector<14x384xf32>
    %69 = vector.extract_strided_slice %66 {offsets = [1, 0, 0], sizes = [1, 14, 384], strides = [1, 1, 1]} : vector<4x14x384xf32> to vector<1x14x384xf32>
    %70 = vector.shape_cast %69 : vector<1x14x384xf32> to vector<14x384xf32>
    %71 = vector.extract_strided_slice %66 {offsets = [2, 0, 0], sizes = [1, 14, 384], strides = [1, 1, 1]} : vector<4x14x384xf32> to vector<1x14x384xf32>
    %72 = vector.shape_cast %71 : vector<1x14x384xf32> to vector<14x384xf32>
    %73 = vector.extract_strided_slice %66 {offsets = [3, 0, 0], sizes = [1, 14, 384], strides = [1, 1, 1]} : vector<4x14x384xf32> to vector<1x14x384xf32>
    %74 = vector.shape_cast %73 : vector<1x14x384xf32> to vector<14x384xf32>
    %75 = tpu.concatenate %68, %70, %72, %74 in 0 : vector<14x384xf32>, vector<14x384xf32>, vector<14x384xf32>, vector<14x384xf32> -> vector<56x384xf32>
    %76 = arith.truncf %75 : vector<56x384xf32> to vector<56x384xbf16>
    %c0_14 = arith.constant 0 : index
    %c0_15 = arith.constant 0 : index
    %77 = vector.load %arg4[%c0_14, %c0_15] : memref<384x128xbf16, #tpu.memory_space<vmem>>, vector<384x128xbf16>
    %cst_16 = arith.constant dense<0.000000e+00> : vector<56x128xf32>
    %78 = tpu.matmul %76, %77, %cst_16 {dimension_numbers = #tpu.dot_dimension_numbers<[1], [0], [0], [1], [0, 0, 1, 1], [], []>} : vector<56x384xbf16>, vector<384x128xbf16>, vector<56x128xf32> -> vector<56x128xf32>
    %c0_17 = arith.constant 0 : index
    %c0_18 = arith.constant 0 : index
    %79 = vector.load %arg5[%c0_17, %c0_18] : memref<1x128xf32, #tpu.memory_space<vmem>>, vector<1x128xf32>
    %80 = vector.broadcast %79 : vector<1x128xf32> to vector<56x128xf32>
    %81 = arith.addf %78, %80 : vector<56x128xf32>
    %82 = vector.extract_strided_slice %81 {offsets = [0, 0], sizes = [14, 128], strides = [1, 1]} : vector<56x128xf32> to vector<14x128xf32>
    %83 = vector.extract_strided_slice %81 {offsets = [14, 0], sizes = [14, 128], strides = [1, 1]} : vector<56x128xf32> to vector<14x128xf32>
    %84 = vector.extract_strided_slice %81 {offsets = [28, 0], sizes = [14, 128], strides = [1, 1]} : vector<56x128xf32> to vector<14x128xf32>
    %85 = vector.extract_strided_slice %81 {offsets = [42, 0], sizes = [14, 128], strides = [1, 1]} : vector<56x128xf32> to vector<14x128xf32>
    %86 = vector.shape_cast %82 : vector<14x128xf32> to vector<1x14x128xf32>
    %87 = vector.shape_cast %83 : vector<14x128xf32> to vector<1x14x128xf32>
    %88 = vector.shape_cast %84 : vector<14x128xf32> to vector<1x14x128xf32>
    %89 = vector.shape_cast %85 : vector<14x128xf32> to vector<1x14x128xf32>
    %90 = tpu.concatenate %86, %87, %88, %89 in 0 : vector<1x14x128xf32>, vector<1x14x128xf32>, vector<1x14x128xf32>, vector<1x14x128xf32> -> vector<4x14x128xf32>
    %91 = tpu.concatenate %90, %0 in 1 : vector<4x14x128xf32>, vector<4x1x128xf32> -> vector<4x15x128xf32>
    %92 = vector.extract_strided_slice %91 {offsets = [0, 0, 0], sizes = [4, 13, 128], strides = [1, 1, 1]} : vector<4x15x128xf32> to vector<4x13x128xf32>
    %93 = vector.extract_strided_slice %91 {offsets = [0, 1, 0], sizes = [4, 13, 128], strides = [1, 1, 1]} : vector<4x15x128xf32> to vector<4x13x128xf32>
    %94 = arith.maximumf %92, %93 : vector<4x13x128xf32>
    %95 = vector.extract_strided_slice %91 {offsets = [0, 2, 0], sizes = [4, 13, 128], strides = [1, 1, 1]} : vector<4x15x128xf32> to vector<4x13x128xf32>
    %96 = arith.maximumf %94, %95 : vector<4x13x128xf32>
    %c0_19 = arith.constant 0 : index
    %c0_20 = arith.constant 0 : index
    %c0_21 = arith.constant 0 : index
    %97 = vector.load %arg9[%c0_19, %c0_20, %c0_21] : memref<4x16x128xf32, #tpu.memory_space<vmem>>, vector<4x13x128xf32>
    tpu.vector_store %arg9[%c0_19, %c0_20, %c0_21], %96 {strides = array<i32>} : memref<4x16x128xf32, #tpu.memory_space<vmem>>, vector<4x13x128xf32>,
    %c0_22 = arith.constant 0 : index
    %c0_23 = arith.constant 0 : index
    %c0_24 = arith.constant 0 : index
    %98 = tpu.strided_load %arg9[%c0_22, %c0_23, %c0_24] {strides = array<i32: 1, 2, 1>} : memref<4x16x128xf32, #tpu.memory_space<vmem>>, vector<4x7x128xf32>
    %cst_25 = arith.constant 0.000000e+00 : f32
    %99 = vector.broadcast %cst_25 : f32 to vector<4x7x128xf32>
    %100 = arith.maximumf %98, %99 : vector<4x7x128xf32>
    %101 = tpu.concatenate %0, %100, %0 in 1 : vector<4x1x128xf32>, vector<4x7x128xf32>, vector<4x1x128xf32> -> vector<4x9x128xf32>
    %102 = vector.extract_strided_slice %101 {offsets = [0, 0, 0], sizes = [4, 7, 128], strides = [1, 1, 1]} : vector<4x9x128xf32> to vector<4x7x128xf32>
    %103 = vector.extract_strided_slice %101 {offsets = [0, 1, 0], sizes = [4, 7, 128], strides = [1, 1, 1]} : vector<4x9x128xf32> to vector<4x7x128xf32>
    %104 = vector.extract_strided_slice %101 {offsets = [0, 2, 0], sizes = [4, 7, 128], strides = [1, 1, 1]} : vector<4x9x128xf32> to vector<4x7x128xf32>
    %105 = tpu.concatenate %102, %103, %104 in 2 : vector<4x7x128xf32>, vector<4x7x128xf32>, vector<4x7x128xf32> -> vector<4x7x384xf32>
    %106 = vector.extract_strided_slice %105 {offsets = [0, 0, 0], sizes = [1, 7, 384], strides = [1, 1, 1]} : vector<4x7x384xf32> to vector<1x7x384xf32>
    %107 = vector.shape_cast %106 : vector<1x7x384xf32> to vector<7x384xf32>
    %108 = vector.extract_strided_slice %105 {offsets = [1, 0, 0], sizes = [1, 7, 384], strides = [1, 1, 1]} : vector<4x7x384xf32> to vector<1x7x384xf32>
    %109 = vector.shape_cast %108 : vector<1x7x384xf32> to vector<7x384xf32>
    %110 = vector.extract_strided_slice %105 {offsets = [2, 0, 0], sizes = [1, 7, 384], strides = [1, 1, 1]} : vector<4x7x384xf32> to vector<1x7x384xf32>
    %111 = vector.shape_cast %110 : vector<1x7x384xf32> to vector<7x384xf32>
    %112 = vector.extract_strided_slice %105 {offsets = [3, 0, 0], sizes = [1, 7, 384], strides = [1, 1, 1]} : vector<4x7x384xf32> to vector<1x7x384xf32>
    %113 = vector.shape_cast %112 : vector<1x7x384xf32> to vector<7x384xf32>
    %114 = tpu.concatenate %107, %109, %111, %113 in 0 : vector<7x384xf32>, vector<7x384xf32>, vector<7x384xf32>, vector<7x384xf32> -> vector<28x384xf32>
    %115 = arith.truncf %114 : vector<28x384xf32> to vector<28x384xbf16>
    %c0_26 = arith.constant 0 : index
    %c0_27 = arith.constant 0 : index
    %116 = vector.load %arg4[%c0_26, %c0_27] : memref<384x128xbf16, #tpu.memory_space<vmem>>, vector<384x128xbf16>
    %cst_28 = arith.constant dense<0.000000e+00> : vector<28x128xf32>
    %117 = tpu.matmul %115, %116, %cst_28 {dimension_numbers = #tpu.dot_dimension_numbers<[1], [0], [0], [1], [0, 0, 1, 1], [], []>} : vector<28x384xbf16>, vector<384x128xbf16>, vector<28x128xf32> -> vector<28x128xf32>
    %c0_29 = arith.constant 0 : index
    %c0_30 = arith.constant 0 : index
    %118 = vector.load %arg5[%c0_29, %c0_30] : memref<1x128xf32, #tpu.memory_space<vmem>>, vector<1x128xf32>
    %119 = vector.broadcast %118 : vector<1x128xf32> to vector<28x128xf32>
    %120 = arith.addf %117, %119 : vector<28x128xf32>
    %121 = vector.extract_strided_slice %120 {offsets = [0, 0], sizes = [7, 128], strides = [1, 1]} : vector<28x128xf32> to vector<7x128xf32>
    %122 = vector.extract_strided_slice %120 {offsets = [7, 0], sizes = [7, 128], strides = [1, 1]} : vector<28x128xf32> to vector<7x128xf32>
    %123 = vector.extract_strided_slice %120 {offsets = [14, 0], sizes = [7, 128], strides = [1, 1]} : vector<28x128xf32> to vector<7x128xf32>
    %124 = vector.extract_strided_slice %120 {offsets = [21, 0], sizes = [7, 128], strides = [1, 1]} : vector<28x128xf32> to vector<7x128xf32>
    %125 = vector.shape_cast %121 : vector<7x128xf32> to vector<1x7x128xf32>
    %126 = vector.shape_cast %122 : vector<7x128xf32> to vector<1x7x128xf32>
    %127 = vector.shape_cast %123 : vector<7x128xf32> to vector<1x7x128xf32>
    %128 = vector.shape_cast %124 : vector<7x128xf32> to vector<1x7x128xf32>
    %129 = tpu.concatenate %125, %126, %127, %128 in 0 : vector<1x7x128xf32>, vector<1x7x128xf32>, vector<1x7x128xf32>, vector<1x7x128xf32> -> vector<4x7x128xf32>
    %cst_31 = arith.constant 0.000000e+00 : f32
    %130 = vector.broadcast %cst_31 : f32 to vector<4x7x128xf32>
    %131 = arith.maximumf %129, %130 : vector<4x7x128xf32>
    %132 = tpu.concatenate %0, %131, %0 in 1 : vector<4x1x128xf32>, vector<4x7x128xf32>, vector<4x1x128xf32> -> vector<4x9x128xf32>
    %133 = vector.extract_strided_slice %132 {offsets = [0, 0, 0], sizes = [4, 7, 128], strides = [1, 1, 1]} : vector<4x9x128xf32> to vector<4x7x128xf32>
    %134 = vector.extract_strided_slice %132 {offsets = [0, 1, 0], sizes = [4, 7, 128], strides = [1, 1, 1]} : vector<4x9x128xf32> to vector<4x7x128xf32>
    %135 = vector.extract_strided_slice %132 {offsets = [0, 2, 0], sizes = [4, 7, 128], strides = [1, 1, 1]} : vector<4x9x128xf32> to vector<4x7x128xf32>
    %136 = tpu.concatenate %133, %134, %135 in 2 : vector<4x7x128xf32>, vector<4x7x128xf32>, vector<4x7x128xf32> -> vector<4x7x384xf32>
    %137 = vector.extract_strided_slice %136 {offsets = [0, 0, 0], sizes = [1, 7, 384], strides = [1, 1, 1]} : vector<4x7x384xf32> to vector<1x7x384xf32>
    %138 = vector.shape_cast %137 : vector<1x7x384xf32> to vector<7x384xf32>
    %139 = vector.extract_strided_slice %136 {offsets = [1, 0, 0], sizes = [1, 7, 384], strides = [1, 1, 1]} : vector<4x7x384xf32> to vector<1x7x384xf32>
    %140 = vector.shape_cast %139 : vector<1x7x384xf32> to vector<7x384xf32>
    %141 = vector.extract_strided_slice %136 {offsets = [2, 0, 0], sizes = [1, 7, 384], strides = [1, 1, 1]} : vector<4x7x384xf32> to vector<1x7x384xf32>
    %142 = vector.shape_cast %141 : vector<1x7x384xf32> to vector<7x384xf32>
    %143 = vector.extract_strided_slice %136 {offsets = [3, 0, 0], sizes = [1, 7, 384], strides = [1, 1, 1]} : vector<4x7x384xf32> to vector<1x7x384xf32>
    %144 = vector.shape_cast %143 : vector<1x7x384xf32> to vector<7x384xf32>
    %145 = tpu.concatenate %138, %140, %142, %144 in 0 : vector<7x384xf32>, vector<7x384xf32>, vector<7x384xf32>, vector<7x384xf32> -> vector<28x384xf32>
    %146 = arith.truncf %145 : vector<28x384xf32> to vector<28x384xbf16>
    %c0_32 = arith.constant 0 : index
    %c0_33 = arith.constant 0 : index
    %147 = vector.load %arg4[%c0_32, %c0_33] : memref<384x128xbf16, #tpu.memory_space<vmem>>, vector<384x128xbf16>
    %cst_34 = arith.constant dense<0.000000e+00> : vector<28x128xf32>
    %148 = tpu.matmul %146, %147, %cst_34 {dimension_numbers = #tpu.dot_dimension_numbers<[1], [0], [0], [1], [0, 0, 1, 1], [], []>} : vector<28x384xbf16>, vector<384x128xbf16>, vector<28x128xf32> -> vector<28x128xf32>
    %c0_35 = arith.constant 0 : index
    %c0_36 = arith.constant 0 : index
    %149 = vector.load %arg5[%c0_35, %c0_36] : memref<1x128xf32, #tpu.memory_space<vmem>>, vector<1x128xf32>
    %150 = vector.broadcast %149 : vector<1x128xf32> to vector<28x128xf32>
    %151 = arith.addf %148, %150 : vector<28x128xf32>
    %152 = vector.extract_strided_slice %151 {offsets = [0, 0], sizes = [7, 128], strides = [1, 1]} : vector<28x128xf32> to vector<7x128xf32>
    %153 = vector.extract_strided_slice %151 {offsets = [7, 0], sizes = [7, 128], strides = [1, 1]} : vector<28x128xf32> to vector<7x128xf32>
    %154 = vector.extract_strided_slice %151 {offsets = [14, 0], sizes = [7, 128], strides = [1, 1]} : vector<28x128xf32> to vector<7x128xf32>
    %155 = vector.extract_strided_slice %151 {offsets = [21, 0], sizes = [7, 128], strides = [1, 1]} : vector<28x128xf32> to vector<7x128xf32>
    %156 = vector.shape_cast %152 : vector<7x128xf32> to vector<1x7x128xf32>
    %157 = vector.shape_cast %153 : vector<7x128xf32> to vector<1x7x128xf32>
    %158 = vector.shape_cast %154 : vector<7x128xf32> to vector<1x7x128xf32>
    %159 = vector.shape_cast %155 : vector<7x128xf32> to vector<1x7x128xf32>
    %160 = tpu.concatenate %156, %157, %158, %159 in 0 : vector<1x7x128xf32>, vector<1x7x128xf32>, vector<1x7x128xf32>, vector<1x7x128xf32> -> vector<4x7x128xf32>
    %161 = arith.addf %160, %98 : vector<4x7x128xf32>
    %162 = tpu.concatenate %161, %0 in 1 : vector<4x7x128xf32>, vector<4x1x128xf32> -> vector<4x8x128xf32>
    %163 = vector.extract_strided_slice %162 {offsets = [0, 0, 0], sizes = [4, 6, 128], strides = [1, 1, 1]} : vector<4x8x128xf32> to vector<4x6x128xf32>
    %164 = vector.extract_strided_slice %162 {offsets = [0, 1, 0], sizes = [4, 6, 128], strides = [1, 1, 1]} : vector<4x8x128xf32> to vector<4x6x128xf32>
    %165 = arith.maximumf %163, %164 : vector<4x6x128xf32>
    %166 = vector.extract_strided_slice %162 {offsets = [0, 2, 0], sizes = [4, 6, 128], strides = [1, 1, 1]} : vector<4x8x128xf32> to vector<4x6x128xf32>
    %167 = arith.maximumf %165, %166 : vector<4x6x128xf32>
    %c0_37 = arith.constant 0 : index
    %c0_38 = arith.constant 0 : index
    %c0_39 = arith.constant 0 : index
    %168 = vector.load %arg9[%c0_37, %c0_38, %c0_39] : memref<4x16x128xf32, #tpu.memory_space<vmem>>, vector<4x6x128xf32>
    tpu.vector_store %arg9[%c0_37, %c0_38, %c0_39], %167 {strides = array<i32>} : memref<4x16x128xf32, #tpu.memory_space<vmem>>, vector<4x6x128xf32>,
    %c0_40 = arith.constant 0 : index
    %c0_41 = arith.constant 0 : index
    %c0_42 = arith.constant 0 : index
    %169 = tpu.strided_load %arg9[%c0_40, %c0_41, %c0_42] {strides = array<i32: 1, 2, 1>} : memref<4x16x128xf32, #tpu.memory_space<vmem>>, vector<4x3x128xf32>
    %cst_43 = arith.constant 0.000000e+00 : f32
    %170 = vector.broadcast %cst_43 : f32 to vector<4x3x128xf32>
    %171 = arith.maximumf %169, %170 : vector<4x3x128xf32>
    %172 = tpu.concatenate %0, %171, %0 in 1 : vector<4x1x128xf32>, vector<4x3x128xf32>, vector<4x1x128xf32> -> vector<4x5x128xf32>
    %173 = vector.extract_strided_slice %172 {offsets = [0, 0, 0], sizes = [4, 3, 128], strides = [1, 1, 1]} : vector<4x5x128xf32> to vector<4x3x128xf32>
    %174 = vector.extract_strided_slice %172 {offsets = [0, 1, 0], sizes = [4, 3, 128], strides = [1, 1, 1]} : vector<4x5x128xf32> to vector<4x3x128xf32>
    %175 = vector.extract_strided_slice %172 {offsets = [0, 2, 0], sizes = [4, 3, 128], strides = [1, 1, 1]} : vector<4x5x128xf32> to vector<4x3x128xf32>
    %176 = tpu.concatenate %173, %174, %175 in 2 : vector<4x3x128xf32>, vector<4x3x128xf32>, vector<4x3x128xf32> -> vector<4x3x384xf32>
    %177 = vector.extract_strided_slice %176 {offsets = [0, 0, 0], sizes = [1, 3, 384], strides = [1, 1, 1]} : vector<4x3x384xf32> to vector<1x3x384xf32>
    %178 = vector.shape_cast %177 : vector<1x3x384xf32> to vector<3x384xf32>
    %179 = vector.extract_strided_slice %176 {offsets = [1, 0, 0], sizes = [1, 3, 384], strides = [1, 1, 1]} : vector<4x3x384xf32> to vector<1x3x384xf32>
    %180 = vector.shape_cast %179 : vector<1x3x384xf32> to vector<3x384xf32>
    %181 = vector.extract_strided_slice %176 {offsets = [2, 0, 0], sizes = [1, 3, 384], strides = [1, 1, 1]} : vector<4x3x384xf32> to vector<1x3x384xf32>
    %182 = vector.shape_cast %181 : vector<1x3x384xf32> to vector<3x384xf32>
    %183 = vector.extract_strided_slice %176 {offsets = [3, 0, 0], sizes = [1, 3, 384], strides = [1, 1, 1]} : vector<4x3x384xf32> to vector<1x3x384xf32>
    %184 = vector.shape_cast %183 : vector<1x3x384xf32> to vector<3x384xf32>
    %185 = tpu.concatenate %178, %180, %182, %184 in 0 : vector<3x384xf32>, vector<3x384xf32>, vector<3x384xf32>, vector<3x384xf32> -> vector<12x384xf32>
    %186 = arith.truncf %185 : vector<12x384xf32> to vector<12x384xbf16>
    %c0_44 = arith.constant 0 : index
    %c0_45 = arith.constant 0 : index
    %187 = vector.load %arg4[%c0_44, %c0_45] : memref<384x128xbf16, #tpu.memory_space<vmem>>, vector<384x128xbf16>
    %cst_46 = arith.constant dense<0.000000e+00> : vector<12x128xf32>
    %188 = tpu.matmul %186, %187, %cst_46 {dimension_numbers = #tpu.dot_dimension_numbers<[1], [0], [0], [1], [0, 0, 1, 1], [], []>} : vector<12x384xbf16>, vector<384x128xbf16>, vector<12x128xf32> -> vector<12x128xf32>
    %c0_47 = arith.constant 0 : index
    %c0_48 = arith.constant 0 : index
    %189 = vector.load %arg5[%c0_47, %c0_48] : memref<1x128xf32, #tpu.memory_space<vmem>>, vector<1x128xf32>
    %190 = vector.broadcast %189 : vector<1x128xf32> to vector<12x128xf32>
    %191 = arith.addf %188, %190 : vector<12x128xf32>
    %192 = vector.extract_strided_slice %191 {offsets = [0, 0], sizes = [3, 128], strides = [1, 1]} : vector<12x128xf32> to vector<3x128xf32>
    %193 = vector.extract_strided_slice %191 {offsets = [3, 0], sizes = [3, 128], strides = [1, 1]} : vector<12x128xf32> to vector<3x128xf32>
    %194 = vector.extract_strided_slice %191 {offsets = [6, 0], sizes = [3, 128], strides = [1, 1]} : vector<12x128xf32> to vector<3x128xf32>
    %195 = vector.extract_strided_slice %191 {offsets = [9, 0], sizes = [3, 128], strides = [1, 1]} : vector<12x128xf32> to vector<3x128xf32>
    %196 = vector.shape_cast %192 : vector<3x128xf32> to vector<1x3x128xf32>
    %197 = vector.shape_cast %193 : vector<3x128xf32> to vector<1x3x128xf32>
    %198 = vector.shape_cast %194 : vector<3x128xf32> to vector<1x3x128xf32>
    %199 = vector.shape_cast %195 : vector<3x128xf32> to vector<1x3x128xf32>
    %200 = tpu.concatenate %196, %197, %198, %199 in 0 : vector<1x3x128xf32>, vector<1x3x128xf32>, vector<1x3x128xf32>, vector<1x3x128xf32> -> vector<4x3x128xf32>
    %cst_49 = arith.constant 0.000000e+00 : f32
    %201 = vector.broadcast %cst_49 : f32 to vector<4x3x128xf32>
    %202 = arith.maximumf %200, %201 : vector<4x3x128xf32>
    %203 = tpu.concatenate %0, %202, %0 in 1 : vector<4x1x128xf32>, vector<4x3x128xf32>, vector<4x1x128xf32> -> vector<4x5x128xf32>
    %204 = vector.extract_strided_slice %203 {offsets = [0, 0, 0], sizes = [4, 3, 128], strides = [1, 1, 1]} : vector<4x5x128xf32> to vector<4x3x128xf32>
    %205 = vector.extract_strided_slice %203 {offsets = [0, 1, 0], sizes = [4, 3, 128], strides = [1, 1, 1]} : vector<4x5x128xf32> to vector<4x3x128xf32>
    %206 = vector.extract_strided_slice %203 {offsets = [0, 2, 0], sizes = [4, 3, 128], strides = [1, 1, 1]} : vector<4x5x128xf32> to vector<4x3x128xf32>
    %207 = tpu.concatenate %204, %205, %206 in 2 : vector<4x3x128xf32>, vector<4x3x128xf32>, vector<4x3x128xf32> -> vector<4x3x384xf32>
    %208 = vector.extract_strided_slice %207 {offsets = [0, 0, 0], sizes = [1, 3, 384], strides = [1, 1, 1]} : vector<4x3x384xf32> to vector<1x3x384xf32>
    %209 = vector.shape_cast %208 : vector<1x3x384xf32> to vector<3x384xf32>
    %210 = vector.extract_strided_slice %207 {offsets = [1, 0, 0], sizes = [1, 3, 384], strides = [1, 1, 1]} : vector<4x3x384xf32> to vector<1x3x384xf32>
    %211 = vector.shape_cast %210 : vector<1x3x384xf32> to vector<3x384xf32>
    %212 = vector.extract_strided_slice %207 {offsets = [2, 0, 0], sizes = [1, 3, 384], strides = [1, 1, 1]} : vector<4x3x384xf32> to vector<1x3x384xf32>
    %213 = vector.shape_cast %212 : vector<1x3x384xf32> to vector<3x384xf32>
    %214 = vector.extract_strided_slice %207 {offsets = [3, 0, 0], sizes = [1, 3, 384], strides = [1, 1, 1]} : vector<4x3x384xf32> to vector<1x3x384xf32>
    %215 = vector.shape_cast %214 : vector<1x3x384xf32> to vector<3x384xf32>
    %216 = tpu.concatenate %209, %211, %213, %215 in 0 : vector<3x384xf32>, vector<3x384xf32>, vector<3x384xf32>, vector<3x384xf32> -> vector<12x384xf32>
    %217 = arith.truncf %216 : vector<12x384xf32> to vector<12x384xbf16>
    %c0_50 = arith.constant 0 : index
    %c0_51 = arith.constant 0 : index
    %218 = vector.load %arg4[%c0_50, %c0_51] : memref<384x128xbf16, #tpu.memory_space<vmem>>, vector<384x128xbf16>
    %cst_52 = arith.constant dense<0.000000e+00> : vector<12x128xf32>
    %219 = tpu.matmul %217, %218, %cst_52 {dimension_numbers = #tpu.dot_dimension_numbers<[1], [0], [0], [1], [0, 0, 1, 1], [], []>} : vector<12x384xbf16>, vector<384x128xbf16>, vector<12x128xf32> -> vector<12x128xf32>
    %c0_53 = arith.constant 0 : index
    %c0_54 = arith.constant 0 : index
    %220 = vector.load %arg5[%c0_53, %c0_54] : memref<1x128xf32, #tpu.memory_space<vmem>>, vector<1x128xf32>
    %221 = vector.broadcast %220 : vector<1x128xf32> to vector<12x128xf32>
    %222 = arith.addf %219, %221 : vector<12x128xf32>
    %223 = vector.extract_strided_slice %222 {offsets = [0, 0], sizes = [3, 128], strides = [1, 1]} : vector<12x128xf32> to vector<3x128xf32>
    %224 = vector.extract_strided_slice %222 {offsets = [3, 0], sizes = [3, 128], strides = [1, 1]} : vector<12x128xf32> to vector<3x128xf32>
    %225 = vector.extract_strided_slice %222 {offsets = [6, 0], sizes = [3, 128], strides = [1, 1]} : vector<12x128xf32> to vector<3x128xf32>
    %226 = vector.extract_strided_slice %222 {offsets = [9, 0], sizes = [3, 128], strides = [1, 1]} : vector<12x128xf32> to vector<3x128xf32>
    %227 = vector.shape_cast %223 : vector<3x128xf32> to vector<1x3x128xf32>
    %228 = vector.shape_cast %224 : vector<3x128xf32> to vector<1x3x128xf32>
    %229 = vector.shape_cast %225 : vector<3x128xf32> to vector<1x3x128xf32>
    %230 = vector.shape_cast %226 : vector<3x128xf32> to vector<1x3x128xf32>
    %231 = tpu.concatenate %227, %228, %229, %230 in 0 : vector<1x3x128xf32>, vector<1x3x128xf32>, vector<1x3x128xf32>, vector<1x3x128xf32> -> vector<4x3x128xf32>
    %232 = arith.addf %231, %169 : vector<4x3x128xf32>
    %233 = tpu.concatenate %232, %0 in 1 : vector<4x3x128xf32>, vector<4x1x128xf32> -> vector<4x4x128xf32>
    %234 = vector.extract_strided_slice %233 {offsets = [0, 0, 0], sizes = [4, 2, 128], strides = [1, 1, 1]} : vector<4x4x128xf32> to vector<4x2x128xf32>
    %235 = vector.extract_strided_slice %233 {offsets = [0, 1, 0], sizes = [4, 2, 128], strides = [1, 1, 1]} : vector<4x4x128xf32> to vector<4x2x128xf32>
    %236 = arith.maximumf %234, %235 : vector<4x2x128xf32>
    %237 = vector.extract_strided_slice %233 {offsets = [0, 2, 0], sizes = [4, 2, 128], strides = [1, 1, 1]} : vector<4x4x128xf32> to vector<4x2x128xf32>
    %238 = arith.maximumf %236, %237 : vector<4x2x128xf32>
    %c0_55 = arith.constant 0 : index
    %c0_56 = arith.constant 0 : index
    %c0_57 = arith.constant 0 : index
    %239 = vector.load %arg9[%c0_55, %c0_56, %c0_57] : memref<4x16x128xf32, #tpu.memory_space<vmem>>, vector<4x2x128xf32>
    tpu.vector_store %arg9[%c0_55, %c0_56, %c0_57], %238 {strides = array<i32>} : memref<4x16x128xf32, #tpu.memory_space<vmem>>, vector<4x2x128xf32>,
    %c0_58 = arith.constant 0 : index
    %c0_59 = arith.constant 0 : index
    %c0_60 = arith.constant 0 : index
    %240 = tpu.strided_load %arg9[%c0_58, %c0_59, %c0_60] {strides = array<i32: 1, 2, 1>} : memref<4x16x128xf32, #tpu.memory_space<vmem>>, vector<4x1x128xf32>
    %cst_61 = arith.constant 0.000000e+00 : f32
    %241 = vector.broadcast %cst_61 : f32 to vector<4x1x128xf32>
    %242 = arith.maximumf %240, %241 : vector<4x1x128xf32>
    %243 = tpu.concatenate %0, %242, %0 in 1 : vector<4x1x128xf32>, vector<4x1x128xf32>, vector<4x1x128xf32> -> vector<4x3x128xf32>
    %244 = vector.extract_strided_slice %243 {offsets = [0, 0, 0], sizes = [4, 1, 128], strides = [1, 1, 1]} : vector<4x3x128xf32> to vector<4x1x128xf32>
    %245 = vector.extract_strided_slice %243 {offsets = [0, 1, 0], sizes = [4, 1, 128], strides = [1, 1, 1]} : vector<4x3x128xf32> to vector<4x1x128xf32>
    %246 = vector.extract_strided_slice %243 {offsets = [0, 2, 0], sizes = [4, 1, 128], strides = [1, 1, 1]} : vector<4x3x128xf32> to vector<4x1x128xf32>
    %247 = tpu.concatenate %244, %245, %246 in 2 : vector<4x1x128xf32>, vector<4x1x128xf32>, vector<4x1x128xf32> -> vector<4x1x384xf32>
    %248 = vector.extract_strided_slice %247 {offsets = [0, 0, 0], sizes = [1, 1, 384], strides = [1, 1, 1]} : vector<4x1x384xf32> to vector<1x1x384xf32>
    %249 = vector.shape_cast %248 : vector<1x1x384xf32> to vector<1x384xf32>
    %250 = vector.extract_strided_slice %247 {offsets = [1, 0, 0], sizes = [1, 1, 384], strides = [1, 1, 1]} : vector<4x1x384xf32> to vector<1x1x384xf32>
    %251 = vector.shape_cast %250 : vector<1x1x384xf32> to vector<1x384xf32>
    %252 = vector.extract_strided_slice %247 {offsets = [2, 0, 0], sizes = [1, 1, 384], strides = [1, 1, 1]} : vector<4x1x384xf32> to vector<1x1x384xf32>
    %253 = vector.shape_cast %252 : vector<1x1x384xf32> to vector<1x384xf32>
    %254 = vector.extract_strided_slice %247 {offsets = [3, 0, 0], sizes = [1, 1, 384], strides = [1, 1, 1]} : vector<4x1x384xf32> to vector<1x1x384xf32>
    %255 = vector.shape_cast %254 : vector<1x1x384xf32> to vector<1x384xf32>
    %256 = tpu.concatenate %249, %251, %253, %255 in 0 : vector<1x384xf32>, vector<1x384xf32>, vector<1x384xf32>, vector<1x384xf32> -> vector<4x384xf32>
    %257 = arith.truncf %256 : vector<4x384xf32> to vector<4x384xbf16>
    %c0_62 = arith.constant 0 : index
    %c0_63 = arith.constant 0 : index
    %258 = vector.load %arg4[%c0_62, %c0_63] : memref<384x128xbf16, #tpu.memory_space<vmem>>, vector<384x128xbf16>
    %cst_64 = arith.constant dense<0.000000e+00> : vector<4x128xf32>
    %259 = tpu.matmul %257, %258, %cst_64 {dimension_numbers = #tpu.dot_dimension_numbers<[1], [0], [0], [1], [0, 0, 1, 1], [], []>} : vector<4x384xbf16>, vector<384x128xbf16>, vector<4x128xf32> -> vector<4x128xf32>
    %c0_65 = arith.constant 0 : index
    %c0_66 = arith.constant 0 : index
    %260 = vector.load %arg5[%c0_65, %c0_66] : memref<1x128xf32, #tpu.memory_space<vmem>>, vector<1x128xf32>
    %261 = vector.broadcast %260 : vector<1x128xf32> to vector<4x128xf32>
    %262 = arith.addf %259, %261 : vector<4x128xf32>
    %263 = vector.extract_strided_slice %262 {offsets = [0, 0], sizes = [1, 128], strides = [1, 1]} : vector<4x128xf32> to vector<1x128xf32>
    %264 = vector.extract_strided_slice %262 {offsets = [1, 0], sizes = [1, 128], strides = [1, 1]} : vector<4x128xf32> to vector<1x128xf32>
    %265 = vector.extract_strided_slice %262 {offsets = [2, 0], sizes = [1, 128], strides = [1, 1]} : vector<4x128xf32> to vector<1x128xf32>
    %266 = vector.extract_strided_slice %262 {offsets = [3, 0], sizes = [1, 128], strides = [1, 1]} : vector<4x128xf32> to vector<1x128xf32>
    %267 = vector.shape_cast %263 : vector<1x128xf32> to vector<1x1x128xf32>
    %268 = vector.shape_cast %264 : vector<1x128xf32> to vector<1x1x128xf32>
    %269 = vector.shape_cast %265 : vector<1x128xf32> to vector<1x1x128xf32>
    %270 = vector.shape_cast %266 : vector<1x128xf32> to vector<1x1x128xf32>
    %271 = tpu.concatenate %267, %268, %269, %270 in 0 : vector<1x1x128xf32>, vector<1x1x128xf32>, vector<1x1x128xf32>, vector<1x1x128xf32> -> vector<4x1x128xf32>
    %cst_67 = arith.constant 0.000000e+00 : f32
    %272 = vector.broadcast %cst_67 : f32 to vector<4x1x128xf32>
    %273 = arith.maximumf %271, %272 : vector<4x1x128xf32>
    %274 = tpu.concatenate %0, %273, %0 in 1 : vector<4x1x128xf32>, vector<4x1x128xf32>, vector<4x1x128xf32> -> vector<4x3x128xf32>
    %275 = vector.extract_strided_slice %274 {offsets = [0, 0, 0], sizes = [4, 1, 128], strides = [1, 1, 1]} : vector<4x3x128xf32> to vector<4x1x128xf32>
    %276 = vector.extract_strided_slice %274 {offsets = [0, 1, 0], sizes = [4, 1, 128], strides = [1, 1, 1]} : vector<4x3x128xf32> to vector<4x1x128xf32>
    %277 = vector.extract_strided_slice %274 {offsets = [0, 2, 0], sizes = [4, 1, 128], strides = [1, 1, 1]} : vector<4x3x128xf32> to vector<4x1x128xf32>
    %278 = tpu.concatenate %275, %276, %277 in 2 : vector<4x1x128xf32>, vector<4x1x128xf32>, vector<4x1x128xf32> -> vector<4x1x384xf32>
    %279 = vector.extract_strided_slice %278 {offsets = [0, 0, 0], sizes = [1, 1, 384], strides = [1, 1, 1]} : vector<4x1x384xf32> to vector<1x1x384xf32>
    %280 = vector.shape_cast %279 : vector<1x1x384xf32> to vector<1x384xf32>
    %281 = vector.extract_strided_slice %278 {offsets = [1, 0, 0], sizes = [1, 1, 384], strides = [1, 1, 1]} : vector<4x1x384xf32> to vector<1x1x384xf32>
    %282 = vector.shape_cast %281 : vector<1x1x384xf32> to vector<1x384xf32>
    %283 = vector.extract_strided_slice %278 {offsets = [2, 0, 0], sizes = [1, 1, 384], strides = [1, 1, 1]} : vector<4x1x384xf32> to vector<1x1x384xf32>
    %284 = vector.shape_cast %283 : vector<1x1x384xf32> to vector<1x384xf32>
    %285 = vector.extract_strided_slice %278 {offsets = [3, 0, 0], sizes = [1, 1, 384], strides = [1, 1, 1]} : vector<4x1x384xf32> to vector<1x1x384xf32>
    %286 = vector.shape_cast %285 : vector<1x1x384xf32> to vector<1x384xf32>
    %287 = tpu.concatenate %280, %282, %284, %286 in 0 : vector<1x384xf32>, vector<1x384xf32>, vector<1x384xf32>, vector<1x384xf32> -> vector<4x384xf32>
    %288 = arith.truncf %287 : vector<4x384xf32> to vector<4x384xbf16>
    %c0_68 = arith.constant 0 : index
    %c0_69 = arith.constant 0 : index
    %289 = vector.load %arg4[%c0_68, %c0_69] : memref<384x128xbf16, #tpu.memory_space<vmem>>, vector<384x128xbf16>
    %cst_70 = arith.constant dense<0.000000e+00> : vector<4x128xf32>
    %290 = tpu.matmul %288, %289, %cst_70 {dimension_numbers = #tpu.dot_dimension_numbers<[1], [0], [0], [1], [0, 0, 1, 1], [], []>} : vector<4x384xbf16>, vector<384x128xbf16>, vector<4x128xf32> -> vector<4x128xf32>
    %c0_71 = arith.constant 0 : index
    %c0_72 = arith.constant 0 : index
    %291 = vector.load %arg5[%c0_71, %c0_72] : memref<1x128xf32, #tpu.memory_space<vmem>>, vector<1x128xf32>
    %292 = vector.broadcast %291 : vector<1x128xf32> to vector<4x128xf32>
    %293 = arith.addf %290, %292 : vector<4x128xf32>
    %294 = vector.extract_strided_slice %293 {offsets = [0, 0], sizes = [1, 128], strides = [1, 1]} : vector<4x128xf32> to vector<1x128xf32>
    %295 = vector.extract_strided_slice %293 {offsets = [1, 0], sizes = [1, 128], strides = [1, 1]} : vector<4x128xf32> to vector<1x128xf32>
    %296 = vector.extract_strided_slice %293 {offsets = [2, 0], sizes = [1, 128], strides = [1, 1]} : vector<4x128xf32> to vector<1x128xf32>
    %297 = vector.extract_strided_slice %293 {offsets = [3, 0], sizes = [1, 128], strides = [1, 1]} : vector<4x128xf32> to vector<1x128xf32>
    %298 = vector.shape_cast %294 : vector<1x128xf32> to vector<1x1x128xf32>
    %299 = vector.shape_cast %295 : vector<1x128xf32> to vector<1x1x128xf32>
    %300 = vector.shape_cast %296 : vector<1x128xf32> to vector<1x1x128xf32>
    %301 = vector.shape_cast %297 : vector<1x128xf32> to vector<1x1x128xf32>
    %302 = tpu.concatenate %298, %299, %300, %301 in 0 : vector<1x1x128xf32>, vector<1x1x128xf32>, vector<1x1x128xf32>, vector<1x1x128xf32> -> vector<4x1x128xf32>
    %303 = arith.addf %302, %240 : vector<4x1x128xf32>
    %304 = vector.extract_strided_slice %303 {offsets = [0, 0, 0], sizes = [1, 1, 128], strides = [1, 1, 1]} : vector<4x1x128xf32> to vector<1x1x128xf32>
    %305 = vector.shape_cast %304 : vector<1x1x128xf32> to vector<1x128xf32>
    %306 = vector.extract_strided_slice %303 {offsets = [1, 0, 0], sizes = [1, 1, 128], strides = [1, 1, 1]} : vector<4x1x128xf32> to vector<1x1x128xf32>
    %307 = vector.shape_cast %306 : vector<1x1x128xf32> to vector<1x128xf32>
    %308 = vector.extract_strided_slice %303 {offsets = [2, 0, 0], sizes = [1, 1, 128], strides = [1, 1, 1]} : vector<4x1x128xf32> to vector<1x1x128xf32>
    %309 = vector.shape_cast %308 : vector<1x1x128xf32> to vector<1x128xf32>
    %310 = vector.extract_strided_slice %303 {offsets = [3, 0, 0], sizes = [1, 1, 128], strides = [1, 1, 1]} : vector<4x1x128xf32> to vector<1x1x128xf32>
    %311 = vector.shape_cast %310 : vector<1x1x128xf32> to vector<1x128xf32>
    %312 = tpu.concatenate %305, %307, %309, %311 in 0 : vector<1x128xf32>, vector<1x128xf32>, vector<1x128xf32>, vector<1x128xf32> -> vector<4x128xf32>
    %313 = arith.truncf %312 : vector<4x128xf32> to vector<4x128xbf16>
    %c0_73 = arith.constant 0 : index
    %c0_74 = arith.constant 0 : index
    %314 = vector.load %arg6[%c0_73, %c0_74] : memref<128x128xbf16, #tpu.memory_space<vmem>>, vector<128x128xbf16>
    %cst_75 = arith.constant dense<0.000000e+00> : vector<4x128xf32>
    %315 = tpu.matmul %313, %314, %cst_75 {dimension_numbers = #tpu.dot_dimension_numbers<[1], [0], [0], [1], [0, 0, 1, 1], [], []>} : vector<4x128xbf16>, vector<128x128xbf16>, vector<4x128xf32> -> vector<4x128xf32>
    %c0_76 = arith.constant 0 : index
    %c0_77 = arith.constant 0 : index
    %316 = vector.load %arg7[%c0_76, %c0_77] : memref<1x128xf32, #tpu.memory_space<vmem>>, vector<1x128xf32>
    %317 = vector.broadcast %316 : vector<1x128xf32> to vector<4x128xf32>
    %318 = arith.addf %315, %317 : vector<4x128xf32>
    %c0_78 = arith.constant 0 : index
    %c0_79 = arith.constant 0 : index
    %c0_80 = arith.constant 0 : index
    %319 = vector.load %arg8[%c0_78, %c0_79, %c0_80] : memref<1x4x128xf32, #tpu.memory_space<vmem>>, vector<1x4x128xf32>
    %320 = vector.shape_cast %319 : vector<1x4x128xf32> to vector<4x128xf32>
    %321 = vector.shape_cast %318 : vector<4x128xf32> to vector<1x4x128xf32>
    tpu.vector_store %arg8[%c0_78, %c0_79, %c0_80], %321 {strides = array<i32>} : memref<1x4x128xf32, #tpu.memory_space<vmem>>, vector<1x4x128xf32>,
    return
  }
  func.func @transform_0(%arg0: i32) -> (i32, i32, i32) {
    %c0_i32 = arith.constant 0 : i32
    %c0_i32_0 = arith.constant 0 : i32
    %c0_i32_1 = arith.constant 0 : i32
    return %arg0, %c0_i32, %c0_i32_0 : i32, i32, i32
  }
  func.func @transform_1(%arg0: i32) -> (i32, i32) {
    %c0_i32 = arith.constant 0 : i32
    %c0_i32_0 = arith.constant 0 : i32
    %c0_i32_1 = arith.constant 0 : i32
    return %c0_i32, %c0_i32_0 : i32, i32
  }
  func.func @transform_2(%arg0: i32) -> (i32, i32) {
    %c0_i32 = arith.constant 0 : i32
    %c0_i32_0 = arith.constant 0 : i32
    %c0_i32_1 = arith.constant 0 : i32
    return %c0_i32, %c0_i32_0 : i32, i32
  }
  func.func @transform_3(%arg0: i32) -> (i32, i32) {
    %c0_i32 = arith.constant 0 : i32
    %c0_i32_0 = arith.constant 0 : i32
    %c0_i32_1 = arith.constant 0 : i32
    return %c0_i32, %c0_i32_0 : i32, i32
  }
  func.func @transform_4(%arg0: i32) -> (i32, i32) {
    %c0_i32 = arith.constant 0 : i32
    %c0_i32_0 = arith.constant 0 : i32
    %c0_i32_1 = arith.constant 0 : i32
    return %c0_i32, %c0_i32_0 : i32, i32
  }
  func.func @transform_5(%arg0: i32) -> (i32, i32) {
    %c0_i32 = arith.constant 0 : i32
    %c0_i32_0 = arith.constant 0 : i32
    %c0_i32_1 = arith.constant 0 : i32
    return %c0_i32, %c0_i32_0 : i32, i32
  }
  func.func @transform_6(%arg0: i32) -> (i32, i32) {
    %c0_i32 = arith.constant 0 : i32
    %c0_i32_0 = arith.constant 0 : i32
    %c0_i32_1 = arith.constant 0 : i32
    return %c0_i32, %c0_i32_0 : i32, i32
  }
  func.func @transform_7(%arg0: i32) -> (i32, i32, i32) {
    %c0_i32 = arith.constant 0 : i32
    %c0_i32_0 = arith.constant 0 : i32
    %c0_i32_1 = arith.constant 0 : i32
    return %arg0, %c0_i32, %c0_i32_0 : i32, i32, i32
  }
}

</mosaic_0001>

<bundles_post_ra>
// kernel: tpu_custom_call.1
= control target key start
LH: loop header
LB: loop body
LE: loop exit
PB: predicated region body
PF: predicated region fallthrough
CT: control target
= control target key end

     0   :  { %s4678_s0 = inlined_call_operand.hbm [shape: bf16[8,16,32], index: 0, kind: input, shape index: {}]   ;;  %s4679_s1 = inlined_call_operand.hbm [shape: bf16[96,128], index: 1, kind: input, shape index: {}]   ;;  %s4680_s2 = inlined_call_operand.vmem [shape: f32[1,128], index: 2, kind: input, shape index: {}]   ;;  %s4681_s3 = inlined_call_operand.hbm [shape: bf16[384,128], index: 3, kind: input, shape index: {}]   ;;  %s4682_s4 = inlined_call_operand.vmem [shape: f32[1,128], index: 4, kind: input, shape index: {}]   ;;  %s4683_s5 = inlined_call_operand.hbm [shape: bf16[128,128], index: 5, kind: input, shape index: {}]   ;;  %s4684_s6 = inlined_call_operand.vmem [shape: f32[1,128], index: 6, kind: input, shape index: {}]   ;;  %s4685_s7 = inlined_call_operand.hbm [shape: f32[2,4,128], index: 7, kind: output, shape index: {}]  }
   0x1   :  { %4688 = sst [smem:[#allocation16_spill]] %s4679_s1 }
   0x2   :  { %12 = vsyncpa [#allocation4], 0 }
   0x3   :  { %14 = vsyncpa [#allocation4 + $0x1], 0 }
   0x4   :  { %15 = vsyncpa [#allocation7], 0 }
   0x5   :  { %16 = vsyncpa [#allocation10], 0 }
   0x6   :  { %17 = vsyncpa [#allocation5], 0 }
   0x7   :  { %19 = vsyncpa [#allocation5 + $0x1], 0  ;;  %s3971_s24 = smov 0   ;;  %s3973_s25 = smov 0  }
   0x8   :  { %s3975_s26 = smov 0   ;;  %s3977_s27 = smov 0  }
   0x9 LB: > { %s3992_s28 = sadd.s32 4294967295, %s3920_s27   ;;  %s3013_s29 = sadd.s32 4294967294, %s3920_s27   ;;  %s3920_s27 = sphi %s3977_s27, %s4704_s27   ;;  %s3916_s26 = sphi %s3975_s26, %s4703_s26   ;;  %s3912_s25 = sphi %s3973_s25, %s4702_s25   ;;  %s3908_s24 = sphi %s3971_s24, %s4701_s24  }
   0xa   : > { %p45_p0 = scmp.ne.s32.totalorder %s3912_s25, %s3908_s24  ;;  %p46_p1 = scmp.eq.s32.totalorder %s3992_s28, 0 }
   0xb   : > { %p195_p2 = scmp.eq.s32.totalorder %s3992_s28, 1  ;;  %p201_p3 = scmp.eq.s32.totalorder %s3013_s29, 1 }
   0xc   : > { %p4001_p4 = por %p46_p1, %p45_p0  ;;  %p3014_p5 = scmp.ge.s32.totalorder %s3920_s27, 1 }
   0xd   : > { %p4006_p6 = por %p201_p3, %p45_p0  ;;  %p208_p7 = scmp.lt.s32.totalorder %s3920_s27, 3 }
   0xe   : > { %s4691_s1 = sld [smem:[#allocation16_spill]]  ;;  %s3922_s13 = smov [#allocation6]  }
   0xf   : > { %p4014_p8 = pnand %p3014_p5, %p208_p7  ;;  %s221_s14 = sshll.u32 %s3922_s13, 4  ;;  %s222_s14 = int_to_ptr.vmem [resolvable:$true] %s221_s14 }
  0x10   : > { %s236_s18 = sshll.u32 %s4681_s3, 4  ;;  %s4686_s19 = smov 64   ;;  %s237_s18 = int_to_ptr.hbm [resolvable:$true] %s236_s18 }
  0x11   : > { %p3653_p9 = pneg %p4014_p8  ;;  %s4687_s20 = smov 4  }
  0x12   : > { %s3925_s21 = smov [#allocation8]   ;;  %s253_s9 = sshll.u32 %s4683_s5, 4  ;;  %s254_s9 = int_to_ptr.hbm [resolvable:$true] %s253_s9 }
  0x13   : > { %p4022_p10 = pnand %p3653_p9, %p46_p1  ;;  %s238_s22 = sshll.u32 %s3925_s21, 4  ;;  %s239_s22 = int_to_ptr.vmem [resolvable:$true] %s238_s22 }
  0x14   : > { %s219_s11 = sshll.u32 %s4691_s1, 4  ;;  %s3926_s10 = smov [#allocation9]   ;;  %s220_s11 = int_to_ptr.hbm [resolvable:$true] %s219_s11 }
  0x15   : > { %3656 = dma.hbm_to_vmem [thread:$0]  (!%p4022_p10), %s220_s11, 768, %s222_s14, [#allocation7], %s4686_s19, %s4686_s19, %s4687_s20  }
  0x16   : > { %3659 = dma.hbm_to_vmem [thread:$0]  (!%p4022_p10), %s237_s18, 3072, %s239_s22, [#allocation7], %s4686_s19, %s4686_s19, %s4687_s20  }
  0x17   : > { %s255_s11 = sshll.u32 %s3926_s10, 4  ;;  %s4044_s13 = sadd.s32 1, %s3920_s27   ;;  %s256_s11 = int_to_ptr.vmem [resolvable:$true] %s255_s11 }
  0x18   : > { %3662 = dma.hbm_to_vmem [thread:$0]  (!%p4022_p10), %s254_s9, 1024, %s256_s11, [#allocation10], %s4686_s19, %s4686_s19, %s4687_s20  }
  0x19   : > { %s29_s14 = ssub.s32 %s3920_s27, %s4044_s13  ;;  %s32_s16 = sadd.s32 1, %s3916_s26 }
  0x1a   : > { %p30_p12 = scmp.eq.s32.totalorder %s29_s14, 0  ;;  %p39_p13 = scmp.ne.s32.totalorder %s3916_s26, %s3912_s25 }
  0x1b   : > { %p40_p0 = scmp.eq.s32.totalorder %s3920_s27, 0  ;;  %p3674_p5 = scmp.lt.s32.totalorder %s3920_s27, 2 }
  0x1c   : > { %s4058_s17 = scalar_select %p30_p12, %s3916_s26, %s32_s16  }
  0x1d   : > { %p4062_p3 = por %p195_p2, %p39_p13  ;;  %s272_s21 = sand.u32 1, %s3916_s26  }
  0x1e   : > { %s3522_s15 = sshll.u32 %s3920_s27, 5  ;;  %p41_p7 = por %p40_p0, %p39_p13 }
  0x1f   : > { %s3019_s22 = sshll.u32 %s272_s21, 5  ;;  %s282_s9 = scalar_lea.hbm %s4678_s0, %s3522_s15 }
  0x20   : > { %s283_s10 = sshll.u32 %s282_s9, 4  ;;  %s276_s11 = scalar_lea.vmem [#allocation3], %s3019_s22  ;;  %s284_s10 = int_to_ptr.hbm [resolvable:$true] %s283_s10 }
  0x21   : > { %s285_s14 = sshll.u32 %s276_s11, 4  ;;  %p4072_p9 = pnand %p3674_p5, %p41_p7  ;;  %s286_s14 = int_to_ptr.vmem [resolvable:$true] %s285_s14 }
  0x22   : > { %s273_s19 = scalar_lea.sflag [#allocation4], %s272_s21  ;;  %s3816_s20 = sshra.s32 %s284_s10, 4  ;;  %s3817_s20 = int_to_ptr.hbm [resolvable:$true] %s3816_s20 }
  0x23   : > { %s3818_s1 = scalar_lea.hbm %s3817_s20, 32  ;;  %p3820_p10 = pneg %p4072_p9 }
  0x24   : > { %p3819_p2 = scmp.ne.s32.totalorder %s3817_s20, %s3818_s1  ;;  %s3823_s22 = scalar_lea.hbm %s4678_s0, 64 }
  0x25   : > { %p3824_p0 = scmp.lt.s32.totalorder %s3817_s20, %s4678_s0  ;;  %p3825_p5 = scmp.lt.s32.totalorder %s3823_s22, %s3818_s1 }
  0x26   : > { %p3821_p12 = pnand %p3820_p10, %p3819_p2 }
  0x27   : > { %p3826_p7 = por %p3825_p5, %p3824_p0 }
  0x28   : > { %p3822_p13 = pneg %p3821_p12 }
  0x2a   : > { %p3827_p11 = pnand %p3826_p7, %p3822_p13 }
  0x2c   : > { %3830 = shalt.err (!%p3827_p11)
}
  0x2d   : > { %s4696_s21 = smov 4   ;;  %s4697_s11 = smov 64  }
  0x2e   : > { %3666 = dma.hbm_to_vmem [thread:$0]  (!%p4072_p9), %s284_s10, 512, %s286_s14, %s273_s19, %s4697_s11, %s4697_s11, %s4696_s21  }
  0x2f   : > { %297 = sbr.rel (%p4014_p8) target bundleno = 1897 (0x769), region = 48  ;;  %s4092_s15 = sand.u32 (!%p4014_p8), 1, %s3912_s25  }
  0x30   : > { %s3024_s20 = sshll.u32 (!%p4014_p8), %s4092_s15, 5  ;;  %s300_s1 = scalar_lea.sflag (!%p4014_p8), [#allocation4], %s4092_s15 }
  0x31   : > { %s303_s23 = scalar_lea.vmem (!%p4014_p8), [#allocation3], %s3024_s20 }
  0x34   : > { %3891 = dma.done.wait (%p4001_p4), %s300_s1, 512  }
  0x35   : > { %3893 = vsyncadd (%p4001_p4), %s300_s1, 4294966784 }
  0x36   : > { %3895 = dma.done.wait (%p46_p1), [#allocation7], 3840  }
  0x37   : > { %3897 = vsyncadd (%p46_p1), [#allocation7], 4294963456 }
  0x38   : > { %3899 = dma.done.wait (%p46_p1), [#allocation10], 1024  }
  0x39   : > { %3901 = vsyncadd (%p46_p1), [#allocation10], 4294966272  ;;  %v3524_v0 = vld [vmem:[%s303_s23 + $0x8] sm:$0xff]  ;;  %v3523_v1 = vld [vmem:[%s303_s23] sm:$0xff]  ;;  %s3927_s30 = smov 32   ;;  %s3928_s12 = smov 64  }
  0x3a   : > { %v3525_v2 = vld [vmem:[%s303_s23 + $0x10] sm:$0xff]  ;;  %v3532_v3 = vld [vmem:[#allocation6 + $0x28] sm:$0xff]  ;;  %v388_v4 = vshrl.u32 %v3524_v0, 16  ;;  %v390_v5 = vshll.u32 %v3524_v0, 16  ;;  %v381_v6 = vshrl.u32 %v3523_v1, 16  ;;  %v383_v7 = vshll.u32 %v3523_v1, 16 }
  0x3b   : > { %524 = vmatpush.bf16.msra.mxu0 %v3532_v3  ;;  %v3531_v8 = vld [vmem:[#allocation6 + $0x20] sm:$0xff]  ;;  %v395_v11 = vshrl.u32 %v3525_v2, 16  ;;  %v397_v12 = vshll.u32 %v3525_v2, 16  ;;  %v3530_v16 = vld [vmem:[#allocation6 + $0x18] sm:$0xff]  ;;  %v417_v19 = vrot.slane %v3524_v0, 1  ;;  %v416_v20 = vrot.slane %v3523_v1, 1 }
  0x3c   : > { %v392_v9 = vrot.slane %v390_v5, 1  ;;  %v385_v10 = vrot.slane %v383_v7, 1  ;;  %v3526_v17 = vld [vmem:[%s303_s23 + $0x18] sm:$0xff]  ;;  %v418_v22 = vrot.slane %v3525_v2, 1  ;;  %v3529_v27 = vld [vmem:[#allocation6 + $0x10] sm:$0xff]  ;;  %v3528_v28 = vld [vmem:[#allocation6 + $0x8] sm:$0xff] }
  0x3d   : > { %v399_v15 = vrot.slane %v397_v12, 1  ;;  %v404_v21 = vshll.u32 %v3526_v17, 16  ;;  %v402_v23 = vshrl.u32 %v3526_v17, 16  ;;  %v419_v26 = vrot.slane %v3526_v17, 1  ;;  %v3527_v29 = vld [vmem:[#allocation6] sm:$0xff]  ;;  %v3540_v52 = vld [vmem:[#allocation8 + $0x38] sm:$0xff] }
  0x3e   : > { %v393_v13 = vor.u32 %v392_v9, %v388_v4  ;;  %v386_v14 = vor.u32 %v385_v10, %v381_v6  ;;  %vm428_vm0 = vcmask 261120   ;;  %vm437_vm1 = vcmask 523264   ;;  %923 = vmatpush.bf16.msra.mxu1 %v3540_v52  ;;  %v3539_v53 = vld [vmem:[#allocation8 + $0x30] sm:$0xff]  ;;  %v3538_v54 = vld [vmem:[#allocation8 + $0x28] sm:$0xff]  ;;  %v3537_v55 = vld [vmem:[#allocation8 + $0x20] sm:$0xff]  ;;  %s3518_s1 = sshll.u32 %s3992_s28, 2 }
  0x3f   : > { %525 = vmatpush.bf16.msra.mxu0 %v3531_v8  ;;  %v400_v18 = vor.u32 %v399_v15, %v395_v11  ;;  %v406_v24 = vrot.slane %v404_v21, 1  ;;  %vm452_vm2 = vcmask 1046528   ;;  %vm513_vm3 = vcmask 785408   ;;  %v3548_v56 = vld [vmem:[#allocation8 + $0x78] sm:$0xff]  ;;  %v3547_v59 = vld [vmem:[#allocation8 + $0x70] sm:$0xff]  ;;  %v3546_v62 = vld [vmem:[#allocation8 + $0x68] sm:$0xff]  ;;  %s2909_s19 = scalar_lea.hbm %s4685_s7, %s3518_s1 }
  0x40   : > { %410 = vrot.lane.b32.xlu0 %v393_v13, %s3927_s30  ;;  %408 = vrot.lane.b32.xlu1 %v386_v14, %s3927_s30  ;;  %vm455_vm4 = vcmask 1045504   ;;  %vm458_vm5 = vcmask 1044480   ;;  %v3556_v57 = vld [vmem:[#allocation8 + $0xb8] sm:$0xff]  ;;  %v3555_v60 = vld [vmem:[#allocation8 + $0xb0] sm:$0xff]  ;;  %v3554_v63 = vld [vmem:[#allocation8 + $0xa8] sm:$0xff]  ;;  %vm553_vm6 = vcmask 1041408  }
  0x41   : > { %412 = vrot.lane.b32.xlu2 %v400_v18, %s3927_s30  ;;  %v407_v25 = vor.u32 %v406_v24, %v402_v23  ;;  %951 = vmatpush.bf16.msra.mxu2 %v3548_v56  ;;  %v3536_v58 = vld [vmem:[#allocation8 + $0x18] sm:$0xff]  ;;  %v3535_v61 = vld [vmem:[#allocation8 + $0x10] sm:$0xff]  ;;  %v3533_v3 = vld [vmem:[#allocation8] sm:$0xff]  ;;  %vm593_vm7 = vcmask 1040384   ;;  %vm3929_vm9 = vmmov 1   ;;  %vm563_vm11 = vcmask 1043456  }
  0x42   : > { %924 = vmatpush.bf16.msra.mxu1 %v3539_v53  ;;  %979 = vmatpush.bf16.msra.mxu3 %v3556_v57  ;;  %v3544_v4 = vld [vmem:[#allocation8 + $0x58] sm:$0xff]  ;;  %v3543_v6 = vld [vmem:[#allocation8 + $0x50] sm:$0xff]  ;;  %v3542_v9 = vld [vmem:[#allocation8 + $0x48] sm:$0xff]  ;;  %vm1706_vm12 = vcmask 1042432   ;;  %s3028_s23 = sshll.u32 %s4092_s15, 2  ;;  %s2913_s29 = sshll.u32 %s2909_s19, 4  ;;  %s2914_s29 = int_to_ptr.hbm [resolvable:$true] %s2913_s29 }
  0x43   : > { %526 = vmatpush.bf16.msra.mxu0 %v3530_v16  ;;  %v3552_v5 = vld [vmem:[#allocation8 + $0x98] sm:$0xff]  ;;  %v3551_v7 = vld [vmem:[#allocation8 + $0x90] sm:$0xff]  ;;  %v3550_v10 = vld [vmem:[#allocation8 + $0x88] sm:$0xff]  ;;  %s349_s16 = scalar_lea.vmem [#allocation11], %s3028_s23  ;;  %s2899_s9 = scalar_lea.sflag [#allocation5], %s4092_s15 }
  0x44   : > { %v3541_v11 = vld [vmem:[#allocation8 + $0x40] sm:$0xff]  ;;  %v4129_v14 = vld [vmem:[%s4680_s2] ss:$0 sm:$0xff]  ;;  %vm3169_vm8 = vmneg %vm593_vm7  ;;  %s2911_s22 = sshll.u32 %s349_s16, 4  ;;  %s3860_s28 = sshra.s32 %s2914_s29, 4  ;;  %s2912_s22 = int_to_ptr.vmem [resolvable:$true] %s2911_s22  ;;  %s3861_s28 = int_to_ptr.hbm [resolvable:$true] %s3860_s28 }
  0x45   : > { %952 = vmatpush.bf16.msra.mxu2 %v3547_v59  ;;  %v4123_v12 = vld [vmem:[#allocation8 + $0x80] sm:$0xff]  ;;  %vm4142_vm10 = vmpackc.low %vm3929_vm9, %vm3169_vm8  ;;  %s3862_s21 = scalar_lea.hbm %s3861_s28, 4  ;;  %s3866_s1 = scalar_lea.hbm %s4685_s7, 8 }
  0x46   : > { %925 = vmatpush.bf16.msra.mxu1 %v3538_v54  ;;  %980 = vmatpush.bf16.msra.mxu3 %v3555_v60  ;;  %p3863_p1 = scmp.ne.s32.totalorder %s3861_s28, %s3862_s21  ;;  %p3867_p11 = scmp.lt.s32.totalorder %s3861_s28, %s4685_s7 }
  0x47   : > { %527 = vmatpush.bf16.msra.mxu0 %v3529_v27  ;;  %p3868_p9 = scmp.lt.s32.totalorder %s3866_s1, %s3862_s21 }
  0x48   : > { %422 = vrot.lane.b32.xlu0 %v417_v19, %s3928_s12  ;;  %420 = vrot.lane.b32.xlu1 %v416_v20, %s3928_s12  ;;  %p3864_p4 = pnand %p3863_p1, %p4062_p3 }
  0x49   : > { %424 = vrot.lane.b32.xlu2 %v418_v22, %s3928_s12  ;;  %953 = vmatpush.bf16.msra.mxu2 %v3546_v62  ;;  %p3869_p2 = por %p3868_p9, %p3867_p11 }
  0x4a   : > { %926 = vmatpush.bf16.msra.mxu1 %v3537_v55  ;;  %981 = vmatpush.bf16.msra.mxu3 %v3554_v63  ;;  %p3865_p8 = pneg %p3864_p4 }
  0x4b   : > { %528 = vmatpush.bf16.msra.mxu0 %v3528_v28 }
  0x4c   : > { %p3870_p10 = pnand %p3869_p2, %p3865_p8 }
  0x4e   : > { %927 = vmatpush.bf16.msra.mxu1 %v3536_v58 }
  0x4f   : > { %529 = vmatpush.bf16.msra.mxu0 %v3527_v29 }
  0x50   : > { %414 = vrot.lane.b32.xlu0 %v407_v25, %s3927_s30  ;;  %426 = vrot.lane.b32.xlu1 %v419_v26, %s3928_s12 }
  0x52   : > { %928 = vmatpush.bf16.msra.mxu1 %v3535_v61 }
  0x53   : > { %1181 = vmatpush.bf16.msrb.mxu0 %v3540_v52 }
  0x57   : > { %1182 = vmatpush.bf16.msrb.mxu0 %v3539_v53 }
  0x5b   : > { %1183 = vmatpush.bf16.msrb.mxu0 %v3538_v54 }
  0x5f   : > { %1184 = vmatpush.bf16.msrb.mxu0 %v3537_v55 }
  0x63   : > { %1185 = vmatpush.bf16.msrb.mxu0 %v3536_v58 }
  0x67   : > { %1186 = vmatpush.bf16.msrb.mxu0 %v3535_v61 }
  0x9b   : > { %v413_v32 = vpop.permute.xlu2 %412 }
  0x9c   : > { %v434_v41 = vsel %vm428_vm0, %v3525_v2, %v413_v32  ;;  %v3553_v2 = vld [vmem:[#allocation8 + $0xa0] sm:$0xff] }
  0x9d   : > { %982 = vmatpush.bf16.msra.mxu3 %v3553_v2 }
  0xa1   : > { %983 = vmatpush.bf16.msra.mxu3 %v3552_v5 }
  0xa3   : > { %v425_v42 = vpop.permute.xlu2 %424 }
  0xa4   : > { %v443_v43 = vsel %vm437_vm1, %v434_v41, %v425_v42 }
  0xa5   : > { %v449_v44 = vrot.slane %v443_v43, 2  ;;  %984 = vmatpush.bf16.msra.mxu3 %v3551_v7 }
  0xa9   : > { %985 = vmatpush.bf16.msra.mxu3 %v3550_v10 }
  0xad   : > { %986 = vmatpush.bf16.msra.mxu3 %v4123_v12 }
  0xb2   : > { %v411_v30 = vpop.permute.xlu0 %410  ;;  %v409_v31 = vpop.permute.xlu1 %408 }
  0xb3   : > { %v432_v33 = vsel %vm428_vm0, %v3524_v0, %v411_v30  ;;  %v430_v37 = vsel %vm428_vm0, %v3523_v1, %v409_v31  ;;  %v3534_v0 = vld [vmem:[#allocation8 + $0x8] sm:$0xff]  ;;  %v3545_v1 = vld [vmem:[#allocation8 + $0x60] sm:$0xff] }
  0xb4   : > { %929 = vmatpush.bf16.msra.mxu1 %v3534_v0  ;;  %954 = vmatpush.bf16.msra.mxu2 %v3545_v1 }
  0xb5   : > { %1187 = vmatpush.bf16.msrb.mxu0 %v3534_v0 }
  0xb8   : > { %930 = vmatpush.bf16.msra.mxu1 %v3533_v3  ;;  %955 = vmatpush.bf16.msra.mxu2 %v3544_v4 }
  0xb9   : > { %1188 = vmatpush.bf16.msrb.mxu0 %v3533_v3 }
  0xba   : > { %v423_v34 = vpop.permute.xlu0 %422  ;;  %v421_v35 = vpop.permute.xlu1 %420 }
  0xbb   : > { %v441_v36 = vsel %vm437_vm1, %v432_v33, %v423_v34  ;;  %v439_v39 = vsel %vm437_vm1, %v430_v37, %v421_v35 }
  0xbc   : > { %v447_v38 = vrot.slane %v441_v36, 1  ;;  %1209 = vmatpush.bf16.msrb.mxu1 %v3548_v56  ;;  %956 = vmatpush.bf16.msra.mxu2 %v3543_v6 }
  0xbe   : > { %v454_v40 = vsel %vm452_vm2, %v439_v39, %v447_v38  ;;  %v457_v45 = vsel %vm455_vm4, %v447_v38, %v449_v44 }
  0xbf   : > { %3069 = vmatmul.msk.bf16.vlgmr.msra.gmra.mxu0 %vm513_vm3, %v454_v40 }
  0xc0   : > { %1210 = vmatpush.bf16.msrb.mxu1 %v3547_v59  ;;  %957 = vmatpush.bf16.msra.mxu2 %v3542_v9 }
  0xc2   : > { %v415_v46 = vpop.permute.xlu0 %414  ;;  %v427_v48 = vpop.permute.xlu1 %426 }
  0xc3   : > { %v436_v47 = vsel %vm428_vm0, %v3526_v17, %v415_v46 }
  0xc4   : > { %v445_v49 = vsel %vm437_vm1, %v436_v47, %v427_v48  ;;  %1211 = vmatpush.bf16.msrb.mxu1 %v3546_v62  ;;  %958 = vmatpush.bf16.msra.mxu2 %v3541_v11 }
  0xc5   : > { %v451_v50 = vrot.slane %v445_v49, 3 }
  0xc7   : > { %v460_v51 = vsel %vm458_vm5, %v449_v44, %v451_v50 }
  0xc8   : > { %1237 = vmatpush.bf16.msrb.mxu2 %v3556_v57  ;;  %1212 = vmatpush.bf16.msrb.mxu1 %v3545_v1 }
  0xcc   : > { %1238 = vmatpush.bf16.msrb.mxu2 %v3555_v60  ;;  %1213 = vmatpush.bf16.msrb.mxu1 %v3544_v4 }
  0xcf   : > { %3070 = vmatmul.msk.bf16.gmra.mxu0 %vm513_vm3, %v457_v45 }
  0xd0   : > { %1239 = vmatpush.bf16.msrb.mxu2 %v3554_v63  ;;  %1214 = vmatpush.bf16.msrb.mxu1 %v3543_v6 }
  0xd4   : > { %1240 = vmatpush.bf16.msrb.mxu2 %v3553_v2  ;;  %1215 = vmatpush.bf16.msrb.mxu1 %v3542_v9 }
  0xd8   : > { %1241 = vmatpush.bf16.msrb.mxu2 %v3552_v5  ;;  %1216 = vmatpush.bf16.msrb.mxu1 %v3541_v11 }
  0xdc   : > { %1242 = vmatpush.bf16.msrb.mxu2 %v3551_v7 }
  0xdf   : > { %3071 = vmatmul.msk.bf16.gmra.mxu0 %vm513_vm3, %v460_v51 }
  0xe0   : > { %1243 = vmatpush.bf16.msrb.mxu2 %v3550_v10 }
  0xe4   : > { %1244 = vmatpush.bf16.msrb.mxu2 %v4123_v12 }
  0xef   : > { %3072 = vmatmul.msk.bf16.gmra.mxu0 %vm513_vm3, %v451_v50 }
 0x13c   : > { %v531_v8 = vpop.f32.mrf.mxu0 }
 0x13d   : > { %v532_v16 = vadd.f32 %v4129_v14, %v531_v8 }
 0x13f   : > { %v577_v20 = vmax.f32 %v532_v16, 0.0 }
 0x141   : > { %v594_v26 = vrot.slane %v577_v20, 7 }
 0x143   : > { %v614_v44 = vsel %vm593_vm7, 0.0, %v594_v26 }
 0x144   : > { %v533_v13 = vpop.f32.mrf.mxu0  ;;  %v630_v55 = vrot.slane %v614_v44, 1  ;;  %v644_v59 = vrot.slane %v614_v44, 2 }
 0x145   : > { %v534_v15 = vadd.f32 %v4129_v14, %v533_v13 }
 0x147   : > { %v578_v18 = vmax.f32 %v534_v15, 0.0  ;;  %v554_v21 = vrot.slane %v534_v15, 6 }
 0x149   : > { %v595_v23 = vrot.slane %v578_v18, 7 }
 0x14b   : > { %v596_v30 = vsel %vm593_vm7, %v594_v26, %v595_v23 }
 0x14c   : > { %v536_v17 = vpop.f32.mrf.mxu0  ;;  %v618_v34 = vsel %vm452_vm2, %v596_v30, 0.0 }
 0x14d   : > { %v537_v19 = vadd.f32 %v4129_v14, %v536_v17  ;;  %v631_v49 = vrot.slane %v618_v34, 1  ;;  %v645_v53 = vrot.slane %v618_v34, 2 }
 0x14f   : > { %v555_v22 = vrot.slane %v537_v19, 6  ;;  %v632_v63 = vsel %vm452_vm2, %v630_v55, %v631_v49  ;;  %v646_v2 = vsel %vm455_vm4, %v644_v59, %v645_v53 }
 0x151   : > { %v556_v24 = vsel %vm553_vm6, %v554_v21, %v555_v22 }
 0x152   : > { %v579_v25 = vmax.f32 %v556_v24, 0.0 }
 0x154   : > { %v597_v27 = vrot.slane %v579_v25, 7  ;;  %v538_v28 = vpop.f32.mrf.mxu0 }
 0x155   : > { %v539_v29 = vadd.f32 %v4129_v14, %v538_v28 }
 0x156   : > { %v615_v31 = vsel %vm593_vm7, 0.0, %v597_v27 }
 0x157   : > { %v647_v32 = vrot.slane %v615_v31, 2  ;;  %v557_v33 = vrot.slane %v539_v29, 6  ;;  %v564_v45 = vrot.slane %v539_v29, 4  ;;  %v633_v48 = vrot.slane %v615_v31, 1 }
 0x159   : > { %v558_v35 = vsel %vm553_vm6, %v555_v22, %v557_v33  ;;  %v706_v36 = vsel %vm455_vm4, %v618_v34, %v647_v32 }
 0x15a   : > { %v580_v38 = vmax.f32 %v558_v35, 0.0  ;;  %v3171_v39 = vpack.c.bf16 %v706_v36, %v594_v26 }
 0x15c   : > { %v598_v40 = vrot.slane %v580_v38, 7  ;;  %v541_v41 = vpop.f32.mrf.mxu0  ;;  %3172 = vmatmul.msk.bf16.vlgmr.msra.gmra.mxu1 %vm4142_vm10, %v3171_v39 }
 0x15d   : > { %v542_v42 = vadd.f32 %v4129_v14, %v541_v41 }
 0x15e   : > { %v599_v43 = vsel %vm593_vm7, %v597_v27, %v598_v40 }
 0x15f   : > { %v565_v46 = vrot.slane %v542_v42, 4  ;;  %v619_v47 = vsel %vm452_vm2, %v599_v43, 0.0 }
 0x160   : > { %v634_v50 = vrot.slane %v619_v47, 1  ;;  %v648_v51 = vrot.slane %v619_v47, 2 }
 0x161   : > { %v566_v52 = vsel %vm563_vm11, %v564_v45, %v565_v46 }
 0x162   : > { %v581_v54 = vmax.f32 %v566_v52, 0.0  ;;  %v635_v56 = vsel %vm452_vm2, %v633_v48, %v634_v50  ;;  %v649_v57 = vsel %vm455_vm4, %v647_v32, %v648_v51  ;;  %v660_v21 = vrot.slane %v634_v50, 2 }
 0x163   : > { %v658_v58 = vrot.slane %v635_v56, 2  ;;  %v659_v60 = vrot.slane %v649_v57, 2  ;;  %v662_v28 = vrot.slane %v648_v51, 2 }
 0x164   : > { %v600_v61 = vrot.slane %v581_v54, 7  ;;  %v543_v62 = vpop.f32.mrf.mxu0 }
 0x165   : > { %v544_v0 = vadd.f32 %v4129_v14, %v543_v62  ;;  %v707_v1 = vsel %vm455_vm4, %v631_v49, %v658_v58  ;;  %v708_v3 = vsel %vm455_vm4, %v645_v53, %v659_v60  ;;  %v661_v36 = vsel %vm455_vm4, %v658_v58, %v660_v21 }
 0x166   : > { %v616_v4 = vsel %vm593_vm7, 0.0, %v600_v61  ;;  %v716_v5 = vpack.c.bf16 %v707_v1, %v632_v63  ;;  %v717_v6 = vpack.c.bf16 %v708_v3, %v646_v2  ;;  %v663_v39 = vsel %vm455_vm4, %v659_v60, %v662_v28 }
 0x167   : > { %v567_v7 = vrot.slane %v544_v0, 4  ;;  %v673_v8 = vrot.slane %v616_v4, 4  ;;  %v572_v18 = vrot.slane %v544_v0, 2  ;;  %v636_v22 = vrot.slane %v616_v4, 1 }
 0x168   : > { %959 = vmatmul.bf16.vlgmr.msra.gmra.mxu2 %v716_v5  ;;  %987 = vmatmul.bf16.vlgmr.msra.gmra.mxu3 %v717_v6  ;;  %v650_v23 = vrot.slane %v616_v4, 2 }
 0x169   : > { %v568_v9 = vsel %vm563_vm11, %v565_v46, %v567_v7  ;;  %v709_v11 = vsel %vm563_vm11, %v648_v51, %v673_v8 }
 0x16a   : > { %v582_v10 = vmax.f32 %v568_v9, 0.0  ;;  %v718_v12 = vpack.c.bf16 %v709_v11, %v649_v57 }
 0x16c   : > { %v601_v13 = vrot.slane %v582_v10, 7  ;;  %v546_v15 = vpop.f32.mrf.mxu0  ;;  %936 = vmatmul.bf16.gmra.mxu1 %v718_v12 }
 0x16d   : > { %v547_v16 = vadd.f32 %v4129_v14, %v546_v15 }
 0x16e   : > { %v602_v17 = vsel %vm593_vm7, %v600_v61, %v601_v13 }
 0x16f   : > { %v620_v19 = vsel %vm452_vm2, %v602_v17, 0.0  ;;  %v573_v20 = vrot.slane %v547_v16, 2 }
 0x170   : > { %v637_v24 = vrot.slane %v620_v19, 1  ;;  %v651_v25 = vrot.slane %v620_v19, 2  ;;  %v676_v41 = vrot.slane %v620_v19, 4 }
 0x171   : > { %v574_v26 = vsel %vm455_vm4, %v572_v18, %v573_v20  ;;  %v584_v27 = vmax.f32 %v573_v20, 0.0  ;;  %v4191_v18 = vld [vmem:[%s4682_s4] ss:$0 sm:$0xff] }
 0x172   : > { %v583_v29 = vmax.f32 %v574_v26, 0.0  ;;  %v638_v30 = vsel %vm452_vm2, %v636_v22, %v637_v24  ;;  %v652_v14 = vsel %vm455_vm4, %v650_v23, %v651_v25  ;;  %v677_v52 = vsel %vm563_vm11, %v673_v8, %v676_v41 }
 0x173   : > { %v604_v31 = vrot.slane %v584_v27, 7  ;;  %v674_v32 = vrot.slane %v638_v30, 4  ;;  %v675_v33 = vrot.slane %v652_v14, 4  ;;  %v678_v59 = vrot.slane %v637_v24, 4 }
 0x174   : > { %v603_v34 = vrot.slane %v583_v29, 7  ;;  %v548_v35 = vpop.f32.mrf.mxu0  ;;  %v680_v60 = vrot.slane %v651_v25, 4 }
 0x175   : > { %v710_v38 = vsel %vm563_vm11, %v660_v21, %v674_v32  ;;  %v711_v40 = vsel %vm563_vm11, %v662_v28, %v675_v33  ;;  %v679_v0 = vsel %vm563_vm11, %v674_v32, %v678_v59 }
 0x176   : > { %v605_v42 = vsel %vm593_vm7, %v603_v34, %v604_v31  ;;  %v617_v43 = vsel %vm593_vm7, 0.0, %v603_v34  ;;  %v719_v44 = vpack.c.bf16 %v710_v38, %v661_v36  ;;  %v720_v45 = vpack.c.bf16 %v711_v40, %v663_v39 }
 0x177   : > { %v621_v46 = vsel %vm452_vm2, %v605_v42, 0.0  ;;  %v691_v47 = vrot.slane %v617_v43, 6  ;;  %v639_v48 = vrot.slane %v617_v43, 1  ;;  %v653_v50 = vrot.slane %v617_v43, 2 }
 0x178   : > { %v640_v49 = vrot.slane %v621_v46, 1  ;;  %v654_v51 = vrot.slane %v621_v46, 2  ;;  %964 = vmatmul.bf16.gmra.mxu2 %v719_v44  ;;  %992 = vmatmul.bf16.gmra.mxu3 %v720_v45  ;;  %v694_v63 = vrot.slane %v621_v46, 6  ;;  %v681_v1 = vsel %vm563_vm11, %v675_v33, %v680_v60 }
 0x179   : > { %v712_v53 = vsel %vm553_vm6, %v676_v41, %v691_v47 }
 0x17a   : > { %v721_v54 = vpack.c.bf16 %v712_v53, %v677_v52  ;;  %v641_v55 = vsel %vm452_vm2, %v639_v48, %v640_v49  ;;  %v655_v56 = vsel %vm455_vm4, %v653_v50, %v654_v51  ;;  %v695_v4 = vsel %vm553_vm6, %v691_v47, %v694_v63 }
 0x17b   : > { %v692_v57 = vrot.slane %v641_v55, 6  ;;  %v693_v58 = vrot.slane %v655_v56, 6  ;;  %v724_v5 = vpack.c.bf16 %v695_v4, %v695_v4  ;;  %v696_v6 = vrot.slane %v640_v49, 6 }
 0x17c   : > { %941 = vmatmul.bf16.gmra.mxu1 %v721_v54  ;;  %v698_v7 = vrot.slane %v654_v51, 6 }
 0x17d   : > { %v713_v61 = vsel %vm553_vm6, %v678_v59, %v692_v57  ;;  %v714_v62 = vsel %vm553_vm6, %v680_v60, %v693_v58  ;;  %v697_v8 = vsel %vm553_vm6, %v692_v57, %v696_v6 }
 0x17e   : > { %v722_v2 = vpack.c.bf16 %v713_v61, %v679_v0  ;;  %v723_v3 = vpack.c.bf16 %v714_v62, %v681_v1  ;;  %v699_v9 = vsel %vm553_vm6, %v693_v58, %v698_v7  ;;  %v725_v10 = vpack.c.bf16 %v697_v8, %v697_v8 }
 0x17f   : > { %v726_v11 = vpack.c.bf16 %v699_v9, %v699_v9 }
 0x188   : > { %969 = vmatmul.bf16.gmra.mxu2 %v722_v2  ;;  %997 = vmatmul.bf16.gmra.mxu3 %v723_v3 }
 0x18c   : > { %946 = vmatmul.bf16.gmra.mxu1 %v724_v5 }
 0x198   : > { %974 = vmatmul.bf16.gmra.mxu2 %v725_v10  ;;  %1002 = vmatmul.bf16.gmra.mxu3 %v726_v11 }
 0x1d9   : > { %v932_v12 = vpop.f32.mrf.mxu1 }
 0x1da   : > { %v933_v23 = vadd.f32 %v4191_v18, %v932_v12 }
 0x1e1   : > { %v934_v13 = vpop.f32.mrf.mxu1 }
 0x1e2   : > { %v935_v22 = vadd.f32 %v4191_v18, %v934_v13 }
 0x1e9   : > { %v937_v15 = vpop.f32.mrf.mxu1 }
 0x1ea   : > { %v938_v26 = vadd.f32 %v4191_v18, %v937_v15 }
 0x1eb   : > { %v960_v16 = vpop.f32.mrf.mxu2  ;;  %v988_v17 = vpop.f32.mrf.mxu3 }
 0x1ec   : > { %v961_v25 = vadd.f32 %v960_v16, %v933_v23 }
 0x1ee   : > { %v989_v14 = vadd.f32 %v988_v17, %v961_v25 }
 0x1f0   : > { %v1032_v34 = vmax.f32 %v989_v14, 0.0 }
 0x1f1   : > { %v939_v19 = vpop.f32.mrf.mxu1 }
 0x1f2   : > { %v940_v38 = vadd.f32 %v4191_v18, %v939_v19  ;;  %v1048_v45 = vrot.slane %v1032_v34, 7 }
 0x1f3   : > { %v962_v20 = vpop.f32.mrf.mxu2  ;;  %v990_v21 = vpop.f32.mrf.mxu3 }
 0x1f4   : > { %v963_v24 = vadd.f32 %v962_v20, %v935_v22  ;;  %v1068_v2 = vsel %vm593_vm7, 0.0, %v1048_v45 }
 0x1f5   : > { %v1084_v13 = vrot.slane %v1068_v2, 1 }
 0x1f6   : > { %v991_v27 = vadd.f32 %v990_v21, %v963_v24  ;;  %v1098_v21 = vrot.slane %v1068_v2, 2 }
 0x1f8   : > { %v1033_v32 = vmax.f32 %v991_v27, 0.0  ;;  %v1010_v35 = vrot.slane %v991_v27, 6 }
 0x1f9   : > { %v942_v28 = vpop.f32.mrf.mxu1 }
 0x1fa   : > { %v1049_v39 = vrot.slane %v1033_v32, 7  ;;  %v943_v54 = vadd.f32 %v4191_v18, %v942_v28 }
 0x1fb   : > { %v965_v29 = vpop.f32.mrf.mxu2  ;;  %v993_v30 = vpop.f32.mrf.mxu3 }
 0x1fc   : > { %v966_v31 = vadd.f32 %v965_v29, %v938_v26  ;;  %v1050_v48 = vsel %vm593_vm7, %v1048_v45, %v1049_v39 }
 0x1fd   : > { %v1072_v53 = vsel %vm452_vm2, %v1050_v48, 0.0 }
 0x1fe   : > { %v994_v33 = vadd.f32 %v993_v30, %v966_v31  ;;  %v1085_v8 = vrot.slane %v1072_v53, 1  ;;  %v1099_v12 = vrot.slane %v1072_v53, 2 }
 0x200   : > { %v1011_v36 = vrot.slane %v994_v33, 6  ;;  %v1086_v26 = vsel %vm452_vm2, %v1084_v13, %v1085_v8  ;;  %v1100_v29 = vsel %vm455_vm4, %v1098_v21, %v1099_v12 }
 0x201   : > { %v944_v41 = vpop.f32.mrf.mxu1 }
 0x202   : > { %v1012_v40 = vsel %vm553_vm6, %v1010_v35, %v1011_v36  ;;  %v945_v10 = vadd.f32 %v4191_v18, %v944_v41 }
 0x203   : > { %v1034_v42 = vmax.f32 %v1012_v40, 0.0  ;;  %v967_v43 = vpop.f32.mrf.mxu2  ;;  %v995_v44 = vpop.f32.mrf.mxu3 }
 0x204   : > { %v968_v46 = vadd.f32 %v967_v43, %v940_v38 }
 0x205   : > { %v1051_v47 = vrot.slane %v1034_v42, 7 }
 0x206   : > { %v996_v49 = vadd.f32 %v995_v44, %v968_v46 }
 0x207   : > { %v1069_v50 = vsel %vm593_vm7, 0.0, %v1051_v47 }
 0x208   : > { %v1101_v51 = vrot.slane %v1069_v50, 2  ;;  %v1013_v52 = vrot.slane %v996_v49, 6  ;;  %v1019_v3 = vrot.slane %v996_v49, 4  ;;  %v1087_v6 = vrot.slane %v1069_v50, 1 }
 0x209   : > { %v947_v56 = vpop.f32.mrf.mxu1 }
 0x20a   : > { %v1014_v55 = vsel %vm553_vm6, %v1011_v36, %v1013_v52  ;;  %v1160_v57 = vsel %vm455_vm4, %v1072_v53, %v1101_v51  ;;  %v948_v35 = vadd.f32 %v4191_v18, %v947_v56 }
 0x20b   : > { %v1035_v58 = vmax.f32 %v1014_v55, 0.0  ;;  %v970_v59 = vpop.f32.mrf.mxu2  ;;  %v998_v60 = vpop.f32.mrf.mxu3  ;;  %v3175_v61 = vpack.c.bf16 %v1160_v57, %v1048_v45 }
 0x20c   : > { %v971_v62 = vadd.f32 %v970_v59, %v943_v54 }
 0x20d   : > { %v1052_v63 = vrot.slane %v1035_v58, 7  ;;  %3176 = vmatmul.msk.bf16.vlgmr.msrb.gmra.mxu0 %vm4142_vm10, %v3175_v61 }
 0x20e   : > { %v999_v0 = vadd.f32 %v998_v60, %v971_v62 }
 0x20f   : > { %v1053_v1 = vsel %vm593_vm7, %v1051_v47, %v1052_v63 }
 0x210   : > { %v1073_v4 = vsel %vm452_vm2, %v1053_v1, 0.0  ;;  %v1020_v5 = vrot.slane %v999_v0, 4 }
 0x211   : > { %v4209_v7 = vrot.slane %v1073_v4, 2  ;;  %v1088_v9 = vrot.slane %v1073_v4, 1  ;;  %v949_v37 = vpop.f32.mrf.mxu1 }
 0x212   : > { %v1021_v11 = vsel %vm563_vm11, %v1019_v3, %v1020_v5 }
 0x213   : > { %v1036_v15 = vmax.f32 %v1021_v11, 0.0  ;;  %v972_v16 = vpop.f32.mrf.mxu2  ;;  %v1000_v17 = vpop.f32.mrf.mxu3  ;;  %v1089_v19 = vsel %vm452_vm2, %v1087_v6, %v1088_v9  ;;  %v1103_v20 = vsel %vm455_vm4, %v1101_v51, %v4209_v7  ;;  %v1114_v50 = vrot.slane %v1088_v9, 2 }
 0x214   : > { %v973_v22 = vadd.f32 %v972_v16, %v945_v10  ;;  %v1112_v23 = vrot.slane %v1089_v19, 2  ;;  %v1113_v24 = vrot.slane %v1103_v20, 2  ;;  %v1116_v57 = vrot.slane %v4209_v7, 2 }
 0x215   : > { %v1054_v25 = vrot.slane %v1036_v15, 7 }
 0x216   : > { %v1001_v27 = vadd.f32 %v1000_v17, %v973_v22  ;;  %v1161_v28 = vsel %vm455_vm4, %v1085_v8, %v1112_v23  ;;  %v1162_v30 = vsel %vm455_vm4, %v1099_v12, %v1113_v24  ;;  %v1115_v3 = vsel %vm455_vm4, %v1112_v23, %v1114_v50 }
 0x217   : > { %v1070_v14 = vsel %vm593_vm7, 0.0, %v1054_v25  ;;  %v1170_v31 = vpack.c.bf16 %v1161_v28, %v1086_v26  ;;  %v1171_v32 = vpack.c.bf16 %v1162_v30, %v1100_v29 }
 0x218   : > { %v1022_v33 = vrot.slane %v1001_v27, 4  ;;  %v1127_v34 = vrot.slane %v1070_v14, 4  ;;  %v1027_v47 = vrot.slane %v1001_v27, 2  ;;  %v1090_v51 = vrot.slane %v1070_v14, 1 }
 0x219   : > { %1217 = vmatmul.bf16.vlgmr.msrb.gmra.mxu1 %v1170_v31  ;;  %1245 = vmatmul.bf16.vlgmr.msrb.gmra.mxu2 %v1171_v32  ;;  %v1104_v52 = vrot.slane %v1070_v14, 2 }
 0x21a   : > { %v1023_v36 = vsel %vm563_vm11, %v1020_v5, %v1022_v33  ;;  %v1163_v41 = vsel %vm563_vm11, %v4209_v7, %v1127_v34  ;;  %v1117_v5 = vsel %vm455_vm4, %v1113_v24, %v1116_v57 }
 0x21b   : > { %v1037_v38 = vmax.f32 %v1023_v36, 0.0  ;;  %v975_v39 = vpop.f32.mrf.mxu2  ;;  %v1003_v40 = vpop.f32.mrf.mxu3  ;;  %v1172_v43 = vpack.c.bf16 %v1163_v41, %v1103_v20 }
 0x21c   : > { %v976_v42 = vadd.f32 %v975_v39, %v948_v35 }
 0x21d   : > { %v1055_v44 = vrot.slane %v1037_v38, 7  ;;  %1194 = vmatmul.bf16.gmra.mxu0 %v1172_v43 }
 0x21e   : > { %v1004_v45 = vadd.f32 %v1003_v40, %v976_v42 }
 0x21f   : > { %v1056_v46 = vsel %vm593_vm7, %v1054_v25, %v1055_v44  ;;  %v3564_v44 = vld [vmem:[#allocation8 + $0x38] sm:$0xff] }
 0x220   : > { %v1074_v48 = vsel %vm452_vm2, %v1056_v46, 0.0  ;;  %v1028_v49 = vrot.slane %v1004_v45, 2  ;;  %1637 = vmatpush.bf16.msrb.mxu3 %v3564_v44  ;;  %1780 = vmatpush.bf16.msra.mxu1 %v3564_v44  ;;  %v3563_v46 = vld [vmem:[#allocation8 + $0x30] sm:$0xff] }
 0x221   : > { %v1091_v53 = vrot.slane %v1074_v48, 1  ;;  %v1105_v54 = vrot.slane %v1074_v48, 2  ;;  %v1130_v7 = vrot.slane %v1074_v48, 4 }
 0x222   : > { %v1029_v55 = vsel %vm455_vm4, %v1027_v47, %v1028_v49  ;;  %v1039_v56 = vmax.f32 %v1028_v49, 0.0 }
 0x223   : > { %v1038_v58 = vmax.f32 %v1029_v55, 0.0  ;;  %v977_v59 = vpop.f32.mrf.mxu2  ;;  %v1005_v60 = vpop.f32.mrf.mxu3  ;;  %v1092_v61 = vsel %vm452_vm2, %v1090_v51, %v1091_v53  ;;  %v1106_v62 = vsel %vm455_vm4, %v1104_v52, %v1105_v54  ;;  %v1131_v19 = vsel %vm563_vm11, %v1127_v34, %v1130_v7 }
 0x224   : > { %v1058_v63 = vrot.slane %v1039_v56, 7  ;;  %v1128_v0 = vrot.slane %v1092_v61, 4  ;;  %v1129_v1 = vrot.slane %v1106_v62, 4  ;;  %v1132_v26 = vrot.slane %v1091_v53, 4  ;;  %1638 = vmatpush.bf16.msrb.mxu3 %v3563_v46  ;;  %1781 = vmatpush.bf16.msra.mxu1 %v3563_v46  ;;  %v3561_v59 = vld [vmem:[#allocation8 + $0x20] sm:$0xff] }
 0x225   : > { %v1057_v2 = vrot.slane %v1038_v58, 7  ;;  %v1134_v27 = vrot.slane %v1105_v54, 4  ;;  %v3562_v54 = vld [vmem:[#allocation8 + $0x28] sm:$0xff] }
 0x226   : > { %v1164_v4 = vsel %vm563_vm11, %v1114_v50, %v1128_v0  ;;  %v1165_v6 = vsel %vm563_vm11, %v1116_v57, %v1129_v1  ;;  %v1133_v14 = vsel %vm563_vm11, %v1128_v0, %v1132_v26 }
 0x227   : > { %v1059_v8 = vsel %vm593_vm7, %v1057_v2, %v1058_v63  ;;  %v1071_v9 = vsel %vm593_vm7, 0.0, %v1057_v2  ;;  %v1173_v10 = vpack.c.bf16 %v1164_v4, %v1115_v3  ;;  %v1174_v11 = vpack.c.bf16 %v1165_v6, %v1117_v5  ;;  %v4252_v2 = vld [vmem:[#allocation8 + $0xb8] sm:$0xff] }
 0x228   : > { %v1075_v37 = vsel %vm452_vm2, %v1059_v8, 0.0  ;;  %v1145_v12 = vrot.slane %v1071_v9, 6  ;;  %v1093_v13 = vrot.slane %v1071_v9, 1  ;;  %v1107_v16 = vrot.slane %v1071_v9, 2  ;;  %1639 = vmatpush.bf16.msrb.mxu3 %v3562_v54  ;;  %1782 = vmatpush.bf16.msra.mxu1 %v3562_v54 }
 0x229   : > { %v1094_v15 = vrot.slane %v1075_v37, 1  ;;  %v1108_v17 = vrot.slane %v1075_v37, 2  ;;  %1222 = vmatmul.bf16.gmra.mxu1 %v1173_v10  ;;  %1250 = vmatmul.bf16.gmra.mxu2 %v1174_v11  ;;  %v1148_v30 = vrot.slane %v1075_v37, 6  ;;  %v1135_v31 = vsel %vm563_vm11, %v1129_v1, %v1134_v27 }
 0x22a   : > { %v1166_v20 = vsel %vm553_vm6, %v1130_v7, %v1145_v12  ;;  %1675 = vmatpush.bf16.msra.mxu0 %v4252_v2 }
 0x22b   : > { %v1175_v21 = vpack.c.bf16 %v1166_v20, %v1131_v19  ;;  %v1095_v22 = vsel %vm452_vm2, %v1093_v13, %v1094_v15  ;;  %v1109_v23 = vsel %vm455_vm4, %v1107_v16, %v1108_v17  ;;  %v1149_v34 = vsel %vm553_vm6, %v1145_v12, %v1148_v30  ;;  %v4258_v12 = vld [vmem:[#allocation8 + $0xb0] sm:$0xff]  ;;  %v4262_v19 = vld [vmem:[#allocation8 + $0xa8] sm:$0xff]  ;;  %v3560_v20 = vld [vmem:[#allocation8 + $0x18] sm:$0xff] }
 0x22c   : > { %v1146_v24 = vrot.slane %v1095_v22, 6  ;;  %v1147_v25 = vrot.slane %v1109_v23, 6  ;;  %v1178_v35 = vpack.c.bf16 %v1149_v34, %v1149_v34  ;;  %v1150_v36 = vrot.slane %v1094_v15, 6  ;;  %1640 = vmatpush.bf16.msrb.mxu3 %v3561_v59  ;;  %1783 = vmatpush.bf16.msra.mxu1 %v3561_v59 }
 0x22d   : > { %1199 = vmatmul.bf16.gmra.mxu0 %v1175_v21  ;;  %v1152_v38 = vrot.slane %v1108_v17, 6 }
 0x22e   : > { %v1167_v28 = vsel %vm553_vm6, %v1132_v26, %v1146_v24  ;;  %v1168_v29 = vsel %vm553_vm6, %v1134_v27, %v1147_v25  ;;  %v1151_v39 = vsel %vm553_vm6, %v1146_v24, %v1150_v36  ;;  %1676 = vmatpush.bf16.msra.mxu0 %v4258_v12  ;;  %v4265_v26 = vld [vmem:[#allocation8 + $0xa0] sm:$0xff] }
 0x22f   : > { %v1176_v32 = vpack.c.bf16 %v1167_v28, %v1133_v14  ;;  %v1177_v33 = vpack.c.bf16 %v1168_v29, %v1135_v31  ;;  %v1153_v40 = vsel %vm553_vm6, %v1147_v25, %v1152_v38  ;;  %v1179_v41 = vpack.c.bf16 %v1151_v39, %v1151_v39  ;;  %v3559_v31 = vld [vmem:[#allocation8 + $0x10] sm:$0xff]  ;;  %v3558_v39 = vld [vmem:[#allocation8 + $0x8] sm:$0xff] }
 0x230   : > { %v1180_v42 = vpack.c.bf16 %v1153_v40, %v1153_v40  ;;  %1641 = vmatpush.bf16.msrb.mxu3 %v3560_v20  ;;  %1784 = vmatpush.bf16.msra.mxu1 %v3560_v20  ;;  %v4274_v40 = vld [vmem:[#allocation8 + $0x90] sm:$0xff] }
 0x232   : > { %1677 = vmatpush.bf16.msra.mxu0 %v4262_v19 }
 0x234   : > { %1642 = vmatpush.bf16.msrb.mxu3 %v3559_v31  ;;  %1785 = vmatpush.bf16.msra.mxu1 %v3559_v31 }
 0x236   : > { %1678 = vmatpush.bf16.msra.mxu0 %v4265_v26 }
 0x238   : > { %1643 = vmatpush.bf16.msrb.mxu3 %v3558_v39  ;;  %1786 = vmatpush.bf16.msra.mxu1 %v3558_v39 }
 0x239   : > { %1227 = vmatmul.bf16.gmra.mxu1 %v1176_v32  ;;  %1255 = vmatmul.bf16.gmra.mxu2 %v1177_v33  ;;  %v4270_v32 = vld [vmem:[#allocation8 + $0x98] sm:$0xff] }
 0x23a   : > { %1679 = vmatpush.bf16.msra.mxu0 %v4270_v32 }
 0x23d   : > { %1204 = vmatmul.bf16.gmra.mxu0 %v1178_v35 }
 0x23e   : > { %1680 = vmatpush.bf16.msra.mxu0 %v4274_v40 }
 0x249   : > { %1232 = vmatmul.bf16.gmra.mxu1 %v1179_v41  ;;  %1260 = vmatmul.bf16.gmra.mxu2 %v1180_v42 }
 0x28a   : > { %v1190_v43 = vpop.f32.mrf.mxu0 }
 0x28b   : > { %v1191_v51 = vadd.f32 %v4191_v18, %v1190_v43 }
 0x292   : > { %v1192_v45 = vpop.f32.mrf.mxu0 }
 0x293   : > { %v1193_v52 = vadd.f32 %v4191_v18, %v1192_v45 }
 0x296   : > { %v1218_v47 = vpop.f32.mrf.mxu1 }
 0x297   : > { %v1219_v53 = vadd.f32 %v1218_v47, %v1191_v51  ;;  %v3557_v51 = vld [vmem:[#allocation8] sm:$0xff] }
 0x298   : > { %1644 = vmatpush.bf16.msrb.mxu3 %v3557_v51  ;;  %1787 = vmatpush.bf16.msra.mxu1 %v3557_v51  ;;  %v3567_v51 = vld [vmem:[#allocation8 + $0x50] sm:$0xff] }
 0x29a   : > { %v1195_v48 = vpop.f32.mrf.mxu0 }
 0x29b   : > { %v1196_v8 = vadd.f32 %v4191_v18, %v1195_v48 }
 0x29c   : > { %v1246_v49 = vpop.f32.mrf.mxu2 }
 0x29d   : > { %v1247_v57 = vadd.f32 %v1246_v49, %v1219_v53 }
 0x29e   : > { %v1220_v50 = vpop.f32.mrf.mxu1 }
 0x29f   : > { %v1221_v55 = vadd.f32 %v1220_v50, %v1193_v52  ;;  %v1299_v63 = vrot.slane %v1247_v57, 1  ;;  %v1327_v3 = vrot.slane %v1247_v57, 2  ;;  %v4280_v52 = vld [vmem:[#allocation8 + $0x88] sm:$0xff] }
 0x2a0   : > { %1681 = vmatpush.bf16.msra.mxu0 %v4280_v52 }
 0x2a2   : > { %v1197_v56 = vpop.f32.mrf.mxu0 }
 0x2a3   : > { %v1198_v17 = vadd.f32 %v4191_v18, %v1197_v56 }
 0x2a4   : > { %v1248_v58 = vpop.f32.mrf.mxu2 }
 0x2a5   : > { %v1249_v60 = vadd.f32 %v1248_v58, %v1221_v55 }
 0x2a6   : > { %v1223_v61 = vpop.f32.mrf.mxu1 }
 0x2a7   : > { %v1290_v62 = vsel %vm455_vm4, %v1249_v60, 0.0  ;;  %v1224_v13 = vadd.f32 %v1223_v61, %v1196_v8  ;;  %v1268_v27 = vrot.slane %v1249_v60, 6  ;;  %v3572_v60 = vld [vmem:[#allocation8 + $0x78] sm:$0xff]  ;;  %v4284_v61 = vld [vmem:[#allocation8 + $0x80] sm:$0xff] }
 0x2a8   : > { %v1300_v0 = vrot.slane %v1290_v62, 1  ;;  %v1328_v1 = vrot.slane %v1290_v62, 2  ;;  %1656 = vmatpush.bf16.msra.mxu3 %v3572_v60  ;;  %1799 = vmatpush.bf16.msra.mxu2 %v3572_v60 }
 0x2a9   : > { %1682 = vmatpush.bf16.msra.mxu0 %v4284_v61 }
 0x2aa   : > { %v1301_v4 = vsel %vm452_vm2, %v1299_v63, %v1300_v0  ;;  %v1320_v5 = vmax.f32 %v1290_v62, %v1300_v0  ;;  %v1200_v7 = vpop.f32.mrf.mxu0  ;;  %v1329_v9 = vsel %vm455_vm4, %v1327_v3, %v1328_v1  ;;  %v3571_v3 = vld [vmem:[#allocation8 + $0x70] sm:$0xff] }
 0x2ab   : > { %v1319_v6 = vmax.f32 %v1247_v57, %v1301_v4  ;;  %v1201_v41 = vadd.f32 %v4191_v18, %v1200_v7 }
 0x2ac   : > { %v1348_v10 = vmax.f32 %v1320_v5, %v1328_v1  ;;  %v1251_v11 = vpop.f32.mrf.mxu2  ;;  %1657 = vmatpush.bf16.msra.mxu3 %v3571_v3  ;;  %1800 = vmatpush.bf16.msra.mxu2 %v3571_v3  ;;  %v3565_v3 = vld [vmem:[#allocation8 + $0x40] sm:$0xff] }
 0x2ad   : > { %v1347_v37 = vmax.f32 %v1319_v6, %v1329_v9  ;;  %v1252_v16 = vadd.f32 %v1251_v11, %v1224_v13  ;;  %v3570_v9 = vld [vmem:[#allocation8 + $0x68] sm:$0xff] }
 0x2ae   : > { %1356 = vst [vmem:[#allocation2 + $0x8] sm:$0x1f] %v1348_v10  ;;  %v1225_v15 = vpop.f32.mrf.mxu1 }
 0x2af   : > { %1355 = vst [vmem:[#allocation2] sm:$0xff] %v1347_v37  ;;  %v1226_v21 = vadd.f32 %v1225_v15, %v1198_v17  ;;  %v1269_v23 = vrot.slane %v1252_v16, 6 }
 0x2b0   : > { %1658 = vmatpush.bf16.msra.mxu3 %v3570_v9  ;;  %1801 = vmatpush.bf16.msra.mxu2 %v3570_v9 }
 0x2b1   : > { %v1270_v30 = vsel %vm553_vm6, %v1268_v27, %v1269_v23 }
 0x2b2   : > { %v1202_v22 = vpop.f32.mrf.mxu0  ;;  %v1302_v34 = vrot.slane %v1270_v30, 1  ;;  %v1330_v43 = vrot.slane %v1270_v30, 2 }
 0x2b3   : > { %v1203_v55 = vadd.f32 %v4191_v18, %v1202_v22 }
 0x2b4   : > { %v1253_v24 = vpop.f32.mrf.mxu2 }
 0x2b5   : > { %v1254_v25 = vadd.f32 %v1253_v24, %v1226_v21  ;;  %v3569_v24 = vld [vmem:[#allocation8 + $0x60] sm:$0xff] }
 0x2b6   : > { %v1228_v28 = vpop.f32.mrf.mxu1  ;;  %1659 = vmatpush.bf16.msra.mxu3 %v3569_v24  ;;  %1802 = vmatpush.bf16.msra.mxu2 %v3569_v24 }
 0x2b7   : > { %v1271_v29 = vrot.slane %v1254_v25, 6  ;;  %v1229_v47 = vadd.f32 %v1228_v28, %v1201_v41  ;;  %v1277_v63 = vrot.slane %v1254_v25, 4 }
 0x2b9   : > { %v1272_v14 = vsel %vm553_vm6, %v1269_v23, %v1271_v29 }
 0x2ba   : > { %v1291_v33 = vsel %vm455_vm4, %v1272_v14, 0.0  ;;  %v1205_v38 = vpop.f32.mrf.mxu0  ;;  %v4296_v14 = vld [vmem:[#allocation2] ss:$2 sm:$0x7f] }
 0x2bb   : > { %v1303_v35 = vrot.slane %v1291_v33, 1  ;;  %v1331_v36 = vrot.slane %v1291_v33, 2  ;;  %v1206_v5 = vadd.f32 %v4191_v18, %v1205_v38 }
 0x2bc   : > { %v1256_v42 = vpop.f32.mrf.mxu2 }
 0x2bd   : > { %v1304_v44 = vsel %vm452_vm2, %v1302_v34, %v1303_v35  ;;  %v1322_v45 = vmax.f32 %v1291_v33, %v1303_v35  ;;  %v1332_v49 = vsel %vm455_vm4, %v1330_v43, %v1331_v36  ;;  %v1257_v54 = vadd.f32 %v1256_v42, %v1229_v47 }
 0x2be   : > { %v1321_v46 = vmax.f32 %v1270_v30, %v1304_v44  ;;  %v1230_v48 = vpop.f32.mrf.mxu1  ;;  %v1370_v44 = vmax.f32 %v4296_v14, 0.0 }
 0x2bf   : > { %v1350_v50 = vmax.f32 %v1322_v45, %v1331_v36  ;;  %v1231_v56 = vadd.f32 %v1230_v48, %v1203_v55  ;;  %v1278_v58 = vrot.slane %v1257_v54, 4  ;;  %v3568_v45 = vld [vmem:[#allocation8 + $0x58] sm:$0xff] }
 0x2c0   : > { %v1349_v53 = vmax.f32 %v1321_v46, %v1332_v49  ;;  %1660 = vmatpush.bf16.msra.mxu3 %v3568_v45  ;;  %1803 = vmatpush.bf16.msra.mxu2 %v3568_v45 }
 0x2c1   : > { %1358 = vst [vmem:[#allocation2 + $0x18] sm:$0x1f] %v1350_v50  ;;  %v1279_v4 = vsel %vm563_vm11, %v1277_v63, %v1278_v58 }
 0x2c2   : > { %1357 = vst [vmem:[#allocation2 + $0x10] sm:$0xff] %v1349_v53  ;;  %v1207_v57 = vpop.f32.mrf.mxu0  ;;  %v1305_v10 = vrot.slane %v1279_v4, 1  ;;  %v1333_v15 = vrot.slane %v1279_v4, 2  ;;  %v1378_v53 = vrot.slane %v1370_v44, 7  ;;  %v4343_v44 = vld [vmem:[%s4682_s4] ss:$0 sm:$0xff] }
 0x2c3   : > { %v3566_v57 = vld [vmem:[#allocation8 + $0x48] sm:$0xff] }
 0x2c4   : > { %v1258_v59 = vpop.f32.mrf.mxu2  ;;  %1661 = vmatpush.bf16.msra.mxu3 %v3567_v51  ;;  %1804 = vmatpush.bf16.msra.mxu2 %v3567_v51 }
 0x2c5   : > { %v1259_v62 = vadd.f32 %v1258_v59, %v1231_v56 }
 0x2c6   : > { %v1233_v0 = vpop.f32.mrf.mxu1 }
 0x2c7   : > { %v1280_v1 = vrot.slane %v1259_v62, 4  ;;  %v1234_v13 = vadd.f32 %v1233_v0, %v1206_v5  ;;  %v1285_v25 = vrot.slane %v1259_v62, 2  ;;  %v1386_v62 = vsel %vm593_vm7, 0.0, %v1378_v53 }
 0x2c8   : > { %1662 = vmatpush.bf16.msra.mxu3 %v3566_v57  ;;  %1805 = vmatpush.bf16.msra.mxu2 %v3566_v57 }
 0x2c9   : > { %v1281_v6 = vsel %vm563_vm11, %v1278_v58, %v1280_v1  ;;  %v4291_v8 = vld [vmem:[#allocation2 + $0x10] ss:$2 sm:$0x7f]  ;;  %v3930_v58 = vmov 0.0  }
 0x2ca   : > { %v1292_v7 = vsel %vm455_vm4, %v1281_v6, 0.0  ;;  %v1371_v18 = vmax.f32 %v4291_v8, 0.0  ;;  %v4307_v59 = vrot.slane %v3930_v58, 2 }
 0x2cb   : > { %v1306_v11 = vrot.slane %v1292_v7, 1  ;;  %v1334_v37 = vrot.slane %v1292_v7, 2 }
 0x2cc   : > { %v1261_v16 = vpop.f32.mrf.mxu2  ;;  %v1379_v34 = vrot.slane %v1371_v18, 7  ;;  %1663 = vmatpush.bf16.msra.mxu3 %v3565_v3  ;;  %1806 = vmatpush.bf16.msra.mxu2 %v3565_v3 }
 0x2cd   : > { %v1307_v17 = vsel %vm452_vm2, %v1305_v10, %v1306_v11  ;;  %v1324_v20 = vmax.f32 %v1292_v7, %v1306_v11  ;;  %v1262_v21 = vadd.f32 %v1261_v16, %v1234_v13  ;;  %v1335_v27 = vsel %vm455_vm4, %v1333_v15, %v1334_v37 }
 0x2ce   : > { %v1323_v22 = vmax.f32 %v1279_v4, %v1307_v17  ;;  %v1235_v23 = vpop.f32.mrf.mxu1  ;;  %v1387_v49 = vsel %vm593_vm7, 0.0, %v1379_v34  ;;  %v1400_v4 = vrot.slane %v1386_v62, 2 }
 0x2cf   : > { %v1352_v28 = vmax.f32 %v1324_v20, %v1334_v37  ;;  %v1286_v29 = vrot.slane %v1262_v21, 2  ;;  %v1403_v55 = vrot.slane %v1387_v49, 2  ;;  %v1395_v63 = vrot.slane %v1387_v49, 1 }
 0x2d0   : > { %v1351_v30 = vmax.f32 %v1323_v22, %v1335_v27  ;;  %v1402_v16 = vsel %vm455_vm4, %v1400_v4, %v4307_v59 }
 0x2d1   : > { %1360 = vst [vmem:[#allocation2 + $0x28] sm:$0x1f] %v1352_v28  ;;  %v1287_v31 = vsel %vm455_vm4, %v1285_v25, %v1286_v29  ;;  %v1293_v33 = vsel %vm455_vm4, %v1286_v29, 0.0  ;;  %v1404_v0 = vsel %vm455_vm4, %v1403_v55, %v4307_v59  ;;  %v1426_v9 = vsel %vm452_vm2, %v1386_v62, %v1395_v63 }
 0x2d2   : > { %1359 = vst [vmem:[#allocation2 + $0x20] sm:$0xff] %v1351_v30  ;;  %v1308_v35 = vrot.slane %v1287_v31, 1  ;;  %v1309_v36 = vrot.slane %v1293_v33, 1  ;;  %v1336_v38 = vrot.slane %v1287_v31, 2  ;;  %v1337_v39 = vrot.slane %v1293_v33, 2 }
 0x2d3   : > { %v1411_v6 = vrot.slane %v1404_v0, 1 }
 0x2d4   : > { %v1310_v41 = vsel %vm452_vm2, %v1308_v35, %v1309_v36  ;;  %v1326_v42 = vmax.f32 %v1293_v33, %v1309_v36  ;;  %v1263_v43 = vpop.f32.mrf.mxu2  ;;  %v1338_v47 = vsel %vm455_vm4, %v1336_v38, %v1337_v39  ;;  %v1410_v33 = vrot.slane %v1395_v63, 1 }
 0x2d5   : > { %v1325_v46 = vmax.f32 %v1287_v31, %v1310_v41  ;;  %v1428_v20 = vsel %vm452_vm2, %v1402_v16, %v1411_v6 }
 0x2d6   : > { %v1354_v48 = vmax.f32 %v1326_v42, %v1337_v39 }
 0x2d7   : > { %v1353_v50 = vmax.f32 %v1325_v46, %v1338_v47 }
 0x2d8   : > { %1362 = vst [vmem:[#allocation2 + $0x38] sm:$0x1f] %v1354_v48 }
 0x2d9   : > { %1361 = vst [vmem:[#allocation2 + $0x30] sm:$0xff] %v1353_v50  ;;  %v4304_v54 = vld [vmem:[#allocation2 + $0x20] ss:$2 sm:$0x7f] }
 0x2da   : > { %v1372_v56 = vmax.f32 %v4304_v54, 0.0 }
 0x2dc   : > { %v1380_v60 = vrot.slane %v1372_v56, 7 }
 0x2de   : > { %v1388_v1 = vsel %vm593_vm7, 0.0, %v1380_v60 }
 0x2df   : > { %v1405_v5 = vrot.slane %v1388_v1, 2  ;;  %v1396_v31 = vrot.slane %v1388_v1, 1 }
 0x2e0   : > { %v4313_v7 = vld [vmem:[#allocation2 + $0x30] ss:$2 sm:$0x7f] }
 0x2e1   : > { %v1429_v10 = vsel %vm455_vm4, %v1395_v63, %v1405_v5  ;;  %v1406_v11 = vsel %vm455_vm4, %v1405_v5, %v4307_v59  ;;  %v1373_v37 = vmax.f32 %v4313_v7, 0.0 }
 0x2e2   : > { %v1435_v13 = vpack.c.bf16 %v1429_v10, %v1426_v9  ;;  %v1416_v15 = vrot.slane %v1406_v11, 2 }
 0x2e3   : > { %v1381_v17 = vrot.slane %v1373_v37, 7 }
 0x2e4   : > { %1645 = vmatmul.bf16.vlgmr.msrb.gmra.mxu3 %v1435_v13  ;;  %v1431_v21 = vsel %vm455_vm4, %v1411_v6, %v1416_v15 }
 0x2e5   : > { %v1437_v18 = vpack.c.bf16 %v1431_v21, %v1428_v20  ;;  %v1389_v22 = vsel %vm593_vm7, 0.0, %v1381_v17  ;;  %1818 = vmatpush.bf16.msrb.mxu3 %v4252_v2 }
 0x2e6   : > { %v1407_v23 = vrot.slane %v1389_v22, 2  ;;  %v1420_v24 = vrot.slane %v1389_v22, 3  ;;  %v1397_v36 = vrot.slane %v1389_v22, 1 }
 0x2e7   : > { %1683 = vmatmul.bf16.vlgmr.msra.gmra.mxu0 %v1437_v18 }
 0x2e8   : > { %v1408_v25 = vsel %vm455_vm4, %v1407_v23, %v4307_v59  ;;  %v1432_v28 = vsel %vm458_vm5, %v1405_v5, %v1420_v24  ;;  %v1421_v38 = vrot.slane %v1397_v36, 3 }
 0x2e9   : > { %1819 = vmatpush.bf16.msrb.mxu3 %v4258_v12  ;;  %v1422_v27 = vrot.slane %v1408_v25, 3  ;;  %v1438_v29 = vpack.c.bf16 %v1420_v24, %v1432_v28  ;;  %v1415_v12 = vrot.slane %v1396_v31, 2 }
 0x2eb   : > { %v1434_v30 = vsel %vm458_vm5, %v1416_v15, %v1422_v27  ;;  %v1430_v34 = vsel %vm455_vm4, %v1410_v33, %v1415_v12 }
 0x2ec   : > { %v1440_v2 = vpack.c.bf16 %v1422_v27, %v1434_v30 }
 0x2ed   : > { %1820 = vmatpush.bf16.msrb.mxu3 %v4262_v19  ;;  %v1394_v19 = vrot.slane %v1386_v62, 1 }
 0x2f1   : > { %1821 = vmatpush.bf16.msrb.mxu3 %v4265_v26  ;;  %v1427_v26 = vsel %vm452_vm2, %v1394_v19, %v1410_v33 }
 0x2f2   : > { %v1436_v35 = vpack.c.bf16 %v1430_v34, %v1427_v26 }
 0x2f4   : > { %1650 = vmatmul.bf16.gmra.mxu3 %v1438_v29 }
 0x2f5   : > { %1822 = vmatpush.bf16.msrb.mxu3 %v4270_v32  ;;  %v1433_v32 = vsel %vm458_vm5, %v1415_v12, %v1421_v38 }
 0x2f6   : > { %v1439_v39 = vpack.c.bf16 %v1421_v38, %v1433_v32 }
 0x2f7   : > { %1688 = vmatmul.bf16.gmra.mxu0 %v1440_v2 }
 0x2f9   : > { %1823 = vmatpush.bf16.msrb.mxu3 %v4274_v40 }
 0x2fd   : > { %1824 = vmatpush.bf16.msrb.mxu3 %v4280_v52 }
 0x301   : > { %1825 = vmatpush.bf16.msrb.mxu3 %v4284_v61 }
 0x304   : > { %1664 = vmatmul.bf16.vlgmr.msra.gmra.mxu3 %v1436_v35 }
 0x314   : > { %1669 = vmatmul.bf16.gmra.mxu3 %v1439_v39 }
 0x364   : > { %v1684_v52 = vpop.f32.mrf.mxu0 }
 0x367   : > { %v1646_v40 = vpop.f32.mrf.mxu3 }
 0x368   : > { %v1647_v61 = vadd.f32 %v4343_v44, %v1646_v40 }
 0x36c   : > { %v1686_v47 = vpop.f32.mrf.mxu0 }
 0x36f   : > { %v1648_v41 = vpop.f32.mrf.mxu3 }
 0x370   : > { %v1649_v48 = vadd.f32 %v4343_v44, %v1648_v41 }
 0x374   : > { %v1689_v60 = vpop.f32.mrf.mxu0 }
 0x377   : > { %v1651_v42 = vpop.f32.mrf.mxu3 }
 0x378   : > { %v1652_v57 = vadd.f32 %v4343_v44, %v1651_v42 }
 0x37c   : > { %v1691_v18 = vpop.f32.mrf.mxu0 }
 0x37f   : > { %v1653_v43 = vpop.f32.mrf.mxu3 }
 0x380   : > { %v1654_v11 = vadd.f32 %v4343_v44, %v1653_v43 }
 0x387   : > { %v1665_v45 = vpop.f32.mrf.mxu3 }
 0x388   : > { %v1666_v46 = vadd.f32 %v1665_v45, %v1647_v61 }
 0x38a   : > { %v1685_v50 = vadd.f32 %v1684_v52, %v1666_v46 }
 0x38c   : > { %v1696_v55 = vrot.slane %v1685_v50, 7  ;;  %v1711_v0 = vmax.f32 %v1685_v50, 0.0 }
 0x38e   : > { %v1719_v6 = vrot.slane %v1711_v0, 7 }
 0x38f   : > { %v1667_v49 = vpop.f32.mrf.mxu3 }
 0x390   : > { %v1668_v51 = vadd.f32 %v1667_v49, %v1649_v48  ;;  %v1727_v17 = vsel %vm593_vm7, 0.0, %v1719_v6 }
 0x391   : > { %v1740_v25 = vrot.slane %v1727_v17, 2  ;;  %v1735_v12 = vrot.slane %v1727_v17, 1 }
 0x392   : > { %v1687_v53 = vadd.f32 %v1686_v47, %v1668_v51 }
 0x393   : > { %v1741_v42 = vsel %vm455_vm4, %v1740_v25, %v4307_v59  ;;  %v4395_v25 = vld [vmem:[#allocation8 + $0x60] sm:$0xff] }
 0x394   : > { %v1697_v56 = vrot.slane %v1687_v53, 7  ;;  %v1701_v9 = vrot.slane %v1687_v53, 6 }
 0x396   : > { %v1698_v58 = vsel %vm593_vm7, %v1696_v55, %v1697_v56 }
 0x397   : > { %v1712_v62 = vmax.f32 %v1698_v58, 0.0  ;;  %v1670_v63 = vpop.f32.mrf.mxu3 }
 0x398   : > { %v1671_v1 = vadd.f32 %v1670_v63, %v1652_v57 }
 0x399   : > { %v1720_v3 = vrot.slane %v1712_v62, 7 }
 0x39a   : > { %v1690_v4 = vadd.f32 %v1689_v60, %v1671_v1  ;;  %v4373_v1 = vld [vmem:[#allocation8 + $0x78] sm:$0xff] }
 0x39b   : > { %v1728_v5 = vsel %vm593_vm7, 0.0, %v1720_v3  ;;  %2174 = vmatpush.bf16.msrb.mxu1 %v4373_v1  ;;  %v3588_v3 = vld [vmem:[#allocation8 + $0x38] sm:$0xff] }
 0x39c   : > { %v1702_v10 = vrot.slane %v1690_v4, 6  ;;  %v1742_v37 = vrot.slane %v1728_v5, 2  ;;  %v1736_v20 = vrot.slane %v1728_v5, 1  ;;  %v1707_v27 = vrot.slane %v1690_v4, 5  ;;  %2160 = vmatpush.bf16.msrb.mxu0 %v3588_v3  ;;  %2279 = vmatpush.bf16.msra.mxu3 %v3588_v3  ;;  %v4428_v3 = vld [vmem:[#allocation8 + $0x80] sm:$0xff] }
 0x39e   : > { %v1703_v13 = vsel %vm553_vm6, %v1701_v9, %v1702_v10  ;;  %v1743_v24 = vsel %vm455_vm4, %v1742_v37, %v4307_v59  ;;  %v1749_v31 = vrot.slane %v1736_v20, 1  ;;  %v1765_v33 = vsel %vm452_vm2, %v1727_v17, %v1736_v20  ;;  %v4380_v9 = vld [vmem:[#allocation8 + $0x70] sm:$0xff] }
 0x39f   : > { %v1713_v15 = vmax.f32 %v1703_v13, 0.0  ;;  %v1672_v16 = vpop.f32.mrf.mxu3  ;;  %v1750_v19 = vrot.slane %v1743_v24, 1  ;;  %2175 = vmatpush.bf16.msrb.mxu1 %v4380_v9  ;;  %v4383_v37 = vld [vmem:[#allocation8 + $0xb0] sm:$0xff] }
 0x3a0   : > { %v1673_v21 = vadd.f32 %v1672_v16, %v1654_v11  ;;  %v1766_v40 = vsel %vm452_vm2, %v1735_v12, %v1749_v31  ;;  %v3587_v13 = vld [vmem:[#allocation8 + $0x30] sm:$0xff]  ;;  %v4386_v16 = vld [vmem:[#allocation8 + $0x68] sm:$0xff]  ;;  %v4400_v12 = vld [vmem:[#allocation8 + $0x58] sm:$0xff] }
 0x3a1   : > { %v1721_v22 = vrot.slane %v1713_v15, 7  ;;  %v1767_v52 = vsel %vm452_vm2, %v1741_v42, %v1750_v19  ;;  %2161 = vmatpush.bf16.msrb.mxu0 %v3587_v13  ;;  %2280 = vmatpush.bf16.msra.mxu3 %v3587_v13  ;;  %v4412_v42 = vld [vmem:[#allocation8 + $0x90] sm:$0xff] }
 0x3a2   : > { %v1692_v23 = vadd.f32 %v1691_v18, %v1673_v21  ;;  %v3586_v21 = vld [vmem:[#allocation8 + $0x28] sm:$0xff] }
 0x3a3   : > { %v1729_v28 = vsel %vm593_vm7, 0.0, %v1721_v22  ;;  %2176 = vmatpush.bf16.msrb.mxu1 %v4386_v16 }
 0x3a4   : > { %v1737_v29 = vrot.slane %v1729_v28, 1  ;;  %v1744_v30 = vrot.slane %v1729_v28, 2  ;;  %v1708_v2 = vrot.slane %v1692_v23, 5 }
 0x3a5   : > { %2162 = vmatpush.bf16.msrb.mxu0 %v3586_v21  ;;  %2281 = vmatpush.bf16.msra.mxu3 %v3586_v21 }
 0x3a6   : > { %v1709_v34 = vsel %vm1706_vm12, %v1707_v27, %v1708_v2  ;;  %v1768_v26 = vsel %vm455_vm4, %v1736_v20, %v1744_v30  ;;  %v1754_v35 = vrot.slane %v1737_v29, 2  ;;  %v1745_v36 = vsel %vm455_vm4, %v1744_v30, %v4307_v59  ;;  %v4390_v20 = vld [vmem:[#allocation8 + $0xa8] sm:$0xff]  ;;  %v3585_v29 = vld [vmem:[#allocation8 + $0x20] sm:$0xff] }
 0x3a7   : > { %v1714_v38 = vmax.f32 %v1709_v34, 0.0  ;;  %v1774_v32 = vpack.c.bf16 %v1768_v26, %v1765_v33  ;;  %v1755_v39 = vrot.slane %v1745_v36, 2  ;;  %2177 = vmatpush.bf16.msrb.mxu1 %v4395_v25  ;;  %v4403_v34 = vld [vmem:[#allocation8 + $0x98] sm:$0xff] }
 0x3a8   : > { %v1769_v41 = vsel %vm455_vm4, %v1749_v31, %v1754_v35  ;;  %v3584_v26 = vld [vmem:[#allocation8 + $0x18] sm:$0xff] }
 0x3a9   : > { %1788 = vmatmul.bf16.vlgmr.msra.gmra.mxu1 %v1774_v32  ;;  %v1775_v43 = vpack.c.bf16 %v1769_v41, %v1766_v40  ;;  %v1770_v45 = vsel %vm455_vm4, %v1750_v19, %v1755_v39  ;;  %v1722_v61 = vrot.slane %v1714_v38, 7  ;;  %2163 = vmatpush.bf16.msrb.mxu0 %v3585_v29  ;;  %v4406_v38 = vld [vmem:[#allocation8 + $0x50] sm:$0xff] }
 0x3aa   : > { %v1776_v46 = vpack.c.bf16 %v1770_v45, %v1767_v52  ;;  %2282 = vmatpush.bf16.msra.mxu3 %v3585_v29 }
 0x3ab   : > { %1807 = vmatmul.bf16.vlgmr.msra.gmra.mxu2 %v1775_v43  ;;  %v1730_v47 = vsel %vm593_vm7, 0.0, %v1722_v61  ;;  %2178 = vmatpush.bf16.msrb.mxu1 %v4400_v12  ;;  %v3583_v43 = vld [vmem:[#allocation8 + $0x10] sm:$0xff] }
 0x3ac   : > { %1826 = vmatmul.bf16.vlgmr.msrb.gmra.mxu3 %v1776_v46  ;;  %v1746_v48 = vrot.slane %v1730_v47, 2  ;;  %v1738_v49 = vrot.slane %v1730_v47, 1  ;;  %v1759_v50 = vrot.slane %v1730_v47, 3  ;;  %v4416_v46 = vld [vmem:[#allocation8 + $0x48] sm:$0xff] }
 0x3ad   : > { %2164 = vmatpush.bf16.msrb.mxu0 %v3584_v26 }
 0x3ae   : > { %v1747_v51 = vsel %vm455_vm4, %v1746_v48, %v4307_v59  ;;  %v1760_v53 = vrot.slane %v1738_v49, 3  ;;  %v1771_v56 = vsel %vm458_vm5, %v1744_v30, %v1759_v50  ;;  %v4376_v59 = vld [vmem:[#allocation8 + $0xb8] sm:$0xff]  ;;  %2283 = vmatpush.bf16.msra.mxu3 %v3584_v26 }
 0x3af   : > { %v1761_v55 = vrot.slane %v1747_v51, 3  ;;  %v1777_v58 = vpack.c.bf16 %v1759_v50, %v1771_v56  ;;  %2188 = vmatpush.bf16.msrb.mxu2 %v4376_v59  ;;  %2179 = vmatpush.bf16.msrb.mxu1 %v4406_v38  ;;  %v3582_v50 = vld [vmem:[#allocation8 + $0x8] sm:$0xff] }
 0x3b0   : > { %v1772_v57 = vsel %vm458_vm5, %v1754_v35, %v1760_v53 }
 0x3b1   : > { %v1773_v60 = vsel %vm458_vm5, %v1755_v39, %v1761_v55  ;;  %v1778_v62 = vpack.c.bf16 %v1760_v53, %v1772_v57  ;;  %2165 = vmatpush.bf16.msrb.mxu0 %v3583_v43  ;;  %v4422_v57 = vld [vmem:[#allocation8 + $0x40] sm:$0xff] }
 0x3b2   : > { %v1779_v63 = vpack.c.bf16 %v1761_v55, %v1773_v60  ;;  %2284 = vmatpush.bf16.msra.mxu3 %v3583_v43 }
 0x3b3   : > { %2189 = vmatpush.bf16.msrb.mxu2 %v4383_v37  ;;  %2180 = vmatpush.bf16.msrb.mxu1 %v4416_v46 }
 0x3b5   : > { %2166 = vmatpush.bf16.msrb.mxu0 %v3582_v50 }
 0x3b6   : > { %2285 = vmatpush.bf16.msra.mxu3 %v3582_v50 }
 0x3b7   : > { %2190 = vmatpush.bf16.msrb.mxu2 %v4390_v20  ;;  %2181 = vmatpush.bf16.msrb.mxu1 %v4422_v57 }
 0x3b9   : > { %1793 = vmatmul.bf16.gmra.mxu1 %v1777_v58 }
 0x3bb   : > { %1812 = vmatmul.bf16.gmra.mxu2 %v1778_v62  ;;  %2307 = vmatpush.bf16.msra.mxu1 %v4376_v59 }
 0x3bc   : > { %1831 = vmatmul.bf16.gmra.mxu3 %v1779_v63 }
 0x3bf   : > { %2308 = vmatpush.bf16.msra.mxu1 %v4383_v37 }
 0x3c3   : > { %2309 = vmatpush.bf16.msra.mxu1 %v4390_v20 }
 0x426   : > { %v1789_v0 = vpop.f32.mrf.mxu1 }
 0x427   : > { %v1790_v4 = vadd.f32 %v4343_v44, %v1789_v0 }
 0x42e   : > { %v1791_v5 = vpop.f32.mrf.mxu1  ;;  %v1808_v6 = vpop.f32.mrf.mxu2 }
 0x42f   : > { %v1809_v10 = vadd.f32 %v1808_v6, %v1790_v4  ;;  %v1827_v11 = vpop.f32.mrf.mxu3  ;;  %v1792_v18 = vadd.f32 %v4343_v44, %v1791_v5  ;;  %v3581_v4 = vld [vmem:[#allocation8] sm:$0xff] }
 0x430   : > { %2167 = vmatpush.bf16.msrb.mxu0 %v3581_v4  ;;  %2286 = vmatpush.bf16.msra.mxu3 %v3581_v4 }
 0x431   : > { %v1828_v15 = vadd.f32 %v1827_v11, %v1809_v10 }
 0x433   : > { %v1853_v17 = vadd.f32 %v1828_v15, %v4296_v14  ;;  %v4397_v14 = vld [vmem:[#allocation8 + $0xa0] sm:$0xff]  ;;  %v1839_v35 = vrot.slane %v1828_v15, 7 }
 0x434   : > { %2191 = vmatpush.bf16.msrb.mxu2 %v4397_v14  ;;  %2293 = vmatpush.bf16.msra.mxu0 %v4373_v1 }
 0x435   : > { %v1857_v22 = vsel %vm452_vm2, %v1853_v17, 0.0  ;;  %2310 = vmatpush.bf16.msra.mxu1 %v4397_v14 }
 0x436   : > { %v1865_v23 = vrot.slane %v1857_v22, 1  ;;  %v1810_v24 = vpop.f32.mrf.mxu2  ;;  %v1877_v2 = vrot.slane %v1857_v22, 2  ;;  %v1794_v31 = vpop.f32.mrf.mxu1 }
 0x437   : > { %v1811_v27 = vadd.f32 %v1810_v24, %v1792_v18  ;;  %v1829_v28 = vpop.f32.mrf.mxu3  ;;  %v1795_v32 = vadd.f32 %v4343_v44, %v1794_v31 }
 0x438   : > { %v1873_v30 = vmax.f32 %v1857_v22, %v1865_v23  ;;  %2192 = vmatpush.bf16.msrb.mxu2 %v4403_v34  ;;  %2294 = vmatpush.bf16.msra.mxu0 %v4380_v9 }
 0x439   : > { %v1830_v33 = vadd.f32 %v1829_v28, %v1811_v27  ;;  %2311 = vmatpush.bf16.msra.mxu1 %v4403_v34 }
 0x43a   : > { %v1885_v19 = vmax.f32 %v1873_v30, %v1877_v2 }
 0x43b   : > { %v1840_v36 = vrot.slane %v1830_v33, 7  ;;  %v1844_v51 = vrot.slane %v1830_v33, 6 }
 0x43c   : > { %1889 = vst [vmem:[#allocation2] sm:$0x3f] %v1885_v19  ;;  %2193 = vmatpush.bf16.msrb.mxu2 %v4412_v42  ;;  %2295 = vmatpush.bf16.msra.mxu0 %v4386_v16 }
 0x43d   : > { %v1841_v39 = vsel %vm593_vm7, %v1839_v35, %v1840_v36  ;;  %2312 = vmatpush.bf16.msra.mxu1 %v4412_v42 }
 0x43e   : > { %v1854_v40 = vadd.f32 %v1841_v39, %v4291_v8  ;;  %v1813_v41 = vpop.f32.mrf.mxu2  ;;  %v1796_v49 = vpop.f32.mrf.mxu1  ;;  %v4419_v8 = vld [vmem:[#allocation8 + $0x88] sm:$0xff] }
 0x43f   : > { %v1814_v52 = vadd.f32 %v1813_v41, %v1795_v32  ;;  %v1832_v45 = vpop.f32.mrf.mxu3  ;;  %v1797_v60 = vadd.f32 %v4343_v44, %v1796_v49 }
 0x440   : > { %v1858_v61 = vsel %vm452_vm2, %v1854_v40, 0.0  ;;  %2194 = vmatpush.bf16.msrb.mxu2 %v4419_v8  ;;  %2296 = vmatpush.bf16.msra.mxu0 %v4395_v25 }
 0x441   : > { %v1866_v47 = vrot.slane %v1858_v61, 1  ;;  %v1833_v48 = vadd.f32 %v1832_v45, %v1814_v52  ;;  %v1878_v55 = vrot.slane %v1858_v61, 2  ;;  %2313 = vmatpush.bf16.msra.mxu1 %v4419_v8 }
 0x443   : > { %v1874_v53 = vmax.f32 %v1858_v61, %v1866_v47  ;;  %v1845_v56 = vrot.slane %v1833_v48, 6  ;;  %v4442_v27 = vld [vmem:[#allocation2] ss:$2 sm:$0x7] }
 0x444   : > { %2195 = vmatpush.bf16.msrb.mxu2 %v4428_v3  ;;  %2297 = vmatpush.bf16.msra.mxu0 %v4400_v12 }
 0x445   : > { %v1886_v58 = vmax.f32 %v1874_v53, %v1878_v55  ;;  %v1846_v62 = vsel %vm553_vm6, %v1844_v51, %v1845_v56  ;;  %2314 = vmatpush.bf16.msra.mxu1 %v4428_v3 }
 0x446   : > { %v1855_v63 = vadd.f32 %v1846_v62, %v4304_v54  ;;  %v1815_v0 = vpop.f32.mrf.mxu2  ;;  %v1849_v54 = vrot.slane %v1833_v48, 5 }
 0x447   : > { %1890 = vst [vmem:[#allocation2 + $0x10] sm:$0x3f] %v1886_v58  ;;  %v1816_v5 = vadd.f32 %v1815_v0, %v1797_v60  ;;  %v1834_v6 = vpop.f32.mrf.mxu3  ;;  %v4484_v0 = vld [vmem:[%s4682_s4] ss:$0 sm:$0xff] }
 0x448   : > { %v1859_v10 = vsel %vm452_vm2, %v1855_v63, 0.0  ;;  %2298 = vmatpush.bf16.msra.mxu0 %v4406_v38 }
 0x449   : > { %v1867_v44 = vrot.slane %v1859_v10, 1  ;;  %v1835_v11 = vadd.f32 %v1834_v6, %v1816_v5  ;;  %v1879_v15 = vrot.slane %v1859_v10, 2 }
 0x44b   : > { %v1875_v13 = vmax.f32 %v1859_v10, %v1867_v44  ;;  %v1850_v17 = vrot.slane %v1835_v11, 5 }
 0x44c   : > { %2299 = vmatpush.bf16.msra.mxu0 %v4416_v46 }
 0x44d   : > { %v1887_v21 = vmax.f32 %v1875_v13, %v1879_v15  ;;  %v1851_v18 = vsel %vm1706_vm12, %v1849_v54, %v1850_v17 }
 0x44e   : > { %v1856_v22 = vadd.f32 %v1851_v18, %v4313_v7  ;;  %v4438_v23 = vld [vmem:[#allocation2 + $0x10] ss:$2 sm:$0x7]  ;;  %v1897_v7 = vmax.f32 %v4442_v27, 0.0 }
 0x44f   : > { %1891 = vst [vmem:[#allocation2 + $0x20] sm:$0x3f] %v1887_v21  ;;  %v1898_v1 = vmax.f32 %v4438_v23, 0.0 }
 0x450   : > { %v1860_v59 = vsel %vm452_vm2, %v1856_v22, 0.0  ;;  %v1905_v20 = vrot.slane %v1897_v7, 7  ;;  %2300 = vmatpush.bf16.msra.mxu0 %v4422_v57 }
 0x451   : > { %v1868_v24 = vrot.slane %v1860_v59, 1  ;;  %v1880_v29 = vrot.slane %v1860_v59, 2  ;;  %v1906_v9 = vrot.slane %v1898_v1, 7 }
 0x452   : > { %v1913_v14 = vsel %vm593_vm7, 0.0, %v1905_v20 }
 0x453   : > { %v1876_v28 = vmax.f32 %v1860_v59, %v1868_v24  ;;  %v1914_v33 = vsel %vm593_vm7, 0.0, %v1906_v9  ;;  %v1917_v34 = vsel %vm563_vm11, %v1913_v14, 0.0 }
 0x454   : > { %v1918_v26 = vsel %vm563_vm11, %v1914_v33, 0.0  ;;  %v1925_v41 = vrot.slane %v1917_v34, 1  ;;  %v1930_v48 = vrot.slane %v1917_v34, 2 }
 0x455   : > { %v1888_v37 = vmax.f32 %v1876_v28, %v1880_v29  ;;  %v3273_v39 = vrot.slane %v1918_v26, 6  ;;  %v1935_v43 = vrot.slane %v1918_v26, 5  ;;  %v3274_v52 = vrot.slane %v1918_v26, 7 }
 0x456   : > { %v4449_v30 = vld [vmem:[#allocation2 + $0x20] ss:$2 sm:$0x7] }
 0x457   : > { %1892 = vst [vmem:[#allocation2 + $0x30] sm:$0x3f] %v1888_v37  ;;  %v1899_v2 = vmax.f32 %v4449_v30, 0.0  ;;  %v1953_v47 = vsel %vm1706_vm12, %v1925_v41, %v3273_v39  ;;  %v1952_v53 = vsel %vm1706_vm12, %v1917_v34, %v1935_v43  ;;  %v1954_v55 = vsel %vm1706_vm12, %v1930_v48, %v3274_v52 }
 0x459   : > { %v1907_v31 = vrot.slane %v1899_v2, 7 }
 0x45b   : > { %v1915_v16 = vsel %vm593_vm7, 0.0, %v1907_v31 }
 0x45c   : > { %v1919_v19 = vsel %vm563_vm11, %v1915_v16, 0.0 }
 0x45d   : > { %v1927_v35 = vrot.slane %v1919_v19, 1  ;;  %v1932_v32 = vrot.slane %v1919_v19, 2 }
 0x45e   : > { %v4461_v25 = vld [vmem:[#allocation2 + $0x30] ss:$2 sm:$0x7] }
 0x45f   : > { %v1900_v36 = vmax.f32 %v4461_v25, 0.0  ;;  %v1941_v40 = vrot.slane %v1927_v35, 2  ;;  %v1942_v42 = vrot.slane %v1932_v32, 2  ;;  %v1955_v46 = vsel %vm455_vm4, %v1952_v53, %v1932_v32 }
 0x461   : > { %v1908_v12 = vrot.slane %v1900_v36, 7  ;;  %v1956_v38 = vsel %vm455_vm4, %v1953_v47, %v1941_v40  ;;  %v1957_v58 = vsel %vm455_vm4, %v1954_v55, %v1942_v42 }
 0x463   : > { %v1916_v45 = vsel %vm593_vm7, 0.0, %v1908_v12 }
 0x464   : > { %v1920_v61 = vsel %vm563_vm11, %v1916_v45, 0.0 }
 0x465   : > { %v1959_v49 = vsel %vm593_vm7, %v1941_v40, %v1920_v61  ;;  %v1946_v50 = vrot.slane %v1920_v61, 7  ;;  %v3276_v51 = vrot.slane %v1920_v61, 9 }
 0x466   : > { %v1962_v8 = vpack.c.bf16 %v1959_v49, %v1956_v38 }
 0x467   : > { %v1958_v56 = vsel %vm593_vm7, %v1932_v32, %v1946_v50  ;;  %v1960_v60 = vsel %vm593_vm7, %v1942_v42, %v3276_v51 }
 0x468   : > { %2182 = vmatmul.bf16.vlgmr.msrb.gmra.mxu1 %v1962_v8  ;;  %v1961_v62 = vpack.c.bf16 %v1958_v56, %v1955_v46  ;;  %v1963_v63 = vpack.c.bf16 %v1960_v60, %v1957_v58  ;;  %v4506_v60 = vld [vmem:[#allocation8 + $0xb8] sm:$0xff] }
 0x46a   : > { %2168 = vmatmul.bf16.vlgmr.msrb.gmra.mxu0 %v1961_v62  ;;  %2196 = vmatmul.bf16.vlgmr.msrb.gmra.mxu2 %v1963_v63  ;;  %v3612_v62 = vld [vmem:[#allocation8 + $0x38] sm:$0xff] }
 0x46b   : > { %2665 = vmatpush.bf16.msrb.mxu0 %v4506_v60  ;;  %v4509_v63 = vld [vmem:[#allocation8 + $0x78] sm:$0xff]  ;;  %2639 = vmatpush.bf16.msra.mxu2 %v3612_v62 }
 0x46c   : > { %2652 = vmatpush.bf16.msrb.mxu3 %v4509_v63  ;;  %2753 = vmatpush.bf16.msrb.mxu1 %v3612_v62 }
 0x4e5   : > { %v2183_v5 = vpop.f32.mrf.mxu1 }
 0x4e7   : > { %v2169_v3 = vpop.f32.mrf.mxu0 }
 0x4e8   : > { %v2170_v4 = vadd.f32 %v4484_v0, %v2169_v3  ;;  %v4512_v3 = vld [vmem:[#allocation8 + $0xb0] sm:$0xff] }
 0x4e9   : > { %2666 = vmatpush.bf16.msrb.mxu0 %v4512_v3 }
 0x4ea   : > { %v2184_v6 = vadd.f32 %v2183_v5, %v2170_v4  ;;  %v3611_v4 = vld [vmem:[#allocation8 + $0x30] sm:$0xff] }
 0x4eb   : > { %v4515_v5 = vld [vmem:[#allocation8 + $0x70] sm:$0xff]  ;;  %2640 = vmatpush.bf16.msra.mxu2 %v3611_v4  ;;  %2754 = vmatpush.bf16.msrb.mxu1 %v3611_v4 }
 0x4ec   : > { %2653 = vmatpush.bf16.msrb.mxu3 %v4515_v5 }
 0x4ed   : > { %v2197_v10 = vpop.f32.mrf.mxu2  ;;  %v2185_v15 = vpop.f32.mrf.mxu1 }
 0x4ee   : > { %v2198_v44 = vadd.f32 %v2197_v10, %v2184_v6  ;;  %v4518_v6 = vld [vmem:[#allocation8 + $0xa8] sm:$0xff] }
 0x4ef   : > { %v2171_v11 = vpop.f32.mrf.mxu0  ;;  %2667 = vmatpush.bf16.msrb.mxu0 %v4518_v6  ;;  %v3610_v10 = vld [vmem:[#allocation8 + $0x28] sm:$0xff] }
 0x4f0   : > { %v2203_v54 = vrot.slane %v2198_v44, 3  ;;  %v2172_v57 = vadd.f32 %v4484_v0, %v2171_v11  ;;  %v2212_v17 = vmax.f32 %v2198_v44, 0.0  ;;  %v2206_v24 = vrot.slane %v2198_v44, 6  ;;  %v4521_v44 = vld [vmem:[#allocation8 + $0x68] sm:$0xff]  ;;  %2641 = vmatpush.bf16.msra.mxu2 %v3610_v10  ;;  %v4524_v11 = vld [vmem:[#allocation8 + $0xa0] sm:$0xff]  ;;  %2755 = vmatpush.bf16.msrb.mxu1 %v3610_v10 }
 0x4f1   : > { %2654 = vmatpush.bf16.msrb.mxu3 %v4521_v44 }
 0x4f2   : > { %v2213_v13 = vmax.f32 %v2203_v54, 0.0  ;;  %v2186_v18 = vadd.f32 %v2185_v15, %v2172_v57  ;;  %v2220_v1 = vrot.slane %v2212_v17, 7  ;;  %v3609_v54 = vld [vmem:[#allocation8 + $0x20] sm:$0xff]  ;;  %v3608_v15 = vld [vmem:[#allocation8 + $0x18] sm:$0xff] }
 0x4f3   : > { %v4526_v57 = vld [vmem:[#allocation8 + $0x60] sm:$0xff]  ;;  %2668 = vmatpush.bf16.msrb.mxu0 %v4524_v11  ;;  %v4532_v17 = vld [vmem:[#allocation8 + $0x58] sm:$0xff] }
 0x4f4   : > { %v2221_v21 = vrot.slane %v2213_v13, 7  ;;  %v2228_v31 = vsel %vm593_vm7, 0.0, %v2220_v1  ;;  %v4529_v13 = vld [vmem:[#allocation8 + $0x98] sm:$0xff]  ;;  %2642 = vmatpush.bf16.msra.mxu2 %v3609_v54  ;;  %2756 = vmatpush.bf16.msrb.mxu1 %v3609_v54 }
 0x4f5   : > { %v2199_v22 = vpop.f32.mrf.mxu2  ;;  %v2232_v19 = vsel %vm563_vm11, %v2228_v31, 0.0  ;;  %2655 = vmatpush.bf16.msrb.mxu3 %v4526_v57  ;;  %v4546_v31 = vld [vmem:[#allocation8 + $0x48] sm:$0xff] }
 0x4f6   : > { %v2200_v59 = vadd.f32 %v2199_v22, %v2186_v18  ;;  %v2229_v28 = vsel %vm593_vm7, 0.0, %v2221_v21  ;;  %v2240_v43 = vrot.slane %v2232_v19, 1  ;;  %v2245_v52 = vrot.slane %v2232_v19, 2 }
 0x4f7   : > { %v2233_v9 = vsel %vm563_vm11, %v2229_v28, 0.0  ;;  %2669 = vmatpush.bf16.msrb.mxu0 %v4529_v13  ;;  %v3607_v28 = vld [vmem:[#allocation8 + $0x10] sm:$0xff] }
 0x4f8   : > { %v2207_v29 = vrot.slane %v2200_v59, 6  ;;  %v2210_v7 = vrot.slane %v2200_v59, 1  ;;  %v2250_v14 = vrot.slane %v2233_v9, 5  ;;  %v3373_v36 = vrot.slane %v2233_v9, 6  ;;  %v4536_v59 = vld [vmem:[#allocation8 + $0x90] sm:$0xff]  ;;  %2643 = vmatpush.bf16.msra.mxu2 %v3608_v15  ;;  %2757 = vmatpush.bf16.msrb.mxu1 %v3608_v15 }
 0x4f9   : > { %v3374_v34 = vrot.slane %v2233_v9, 7  ;;  %2656 = vmatpush.bf16.msrb.mxu3 %v4532_v17 }
 0x4fa   : > { %v2208_v37 = vsel %vm553_vm6, %v2206_v24, %v2207_v29  ;;  %v2215_v20 = vmax.f32 %v2210_v7, 0.0  ;;  %v2267_v42 = vsel %vm1706_vm12, %v2232_v19, %v2250_v14  ;;  %v2268_v50 = vsel %vm1706_vm12, %v2240_v43, %v3373_v36  ;;  %v4539_v29 = vld [vmem:[#allocation8 + $0x50] sm:$0xff] }
 0x4fb   : > { %v2214_v2 = vmax.f32 %v2208_v37, 0.0  ;;  %v2269_v51 = vsel %vm1706_vm12, %v2245_v52, %v3374_v34  ;;  %2670 = vmatpush.bf16.msrb.mxu0 %v4536_v59  ;;  %v4542_v37 = vld [vmem:[#allocation8 + $0x88] sm:$0xff] }
 0x4fc   : > { %v2223_v16 = vrot.slane %v2215_v20, 7  ;;  %2644 = vmatpush.bf16.msra.mxu2 %v3607_v28  ;;  %v3606_v20 = vld [vmem:[#allocation8 + $0x8] sm:$0xff]  ;;  %2758 = vmatpush.bf16.msrb.mxu1 %v3607_v28 }
 0x4fd   : > { %v2222_v33 = vrot.slane %v2214_v2, 7  ;;  %2657 = vmatpush.bf16.msrb.mxu3 %v4539_v29 }
 0x4fe   : > { %v2231_v35 = vsel %vm593_vm7, 0.0, %v2223_v16 }
 0x4ff   : > { %v2230_v26 = vsel %vm593_vm7, 0.0, %v2222_v33  ;;  %v2235_v39 = vsel %vm563_vm11, %v2231_v35, 0.0  ;;  %2671 = vmatpush.bf16.msrb.mxu0 %v4542_v37 }
 0x500   : > { %v2234_v32 = vsel %vm563_vm11, %v2230_v26, 0.0  ;;  %v2261_v41 = vrot.slane %v2235_v39, 7  ;;  %v3376_v45 = vrot.slane %v2235_v39, 9  ;;  %v4552_v26 = vld [vmem:[#allocation8 + $0x80] sm:$0xff]  ;;  %2645 = vmatpush.bf16.msra.mxu2 %v3606_v20  ;;  %2759 = vmatpush.bf16.msrb.mxu1 %v3606_v20 }
 0x501   : > { %v2242_v12 = vrot.slane %v2234_v32, 1  ;;  %v2247_v40 = vrot.slane %v2234_v32, 2  ;;  %2658 = vmatpush.bf16.msrb.mxu3 %v4546_v31  ;;  %v3605_v32 = vld [vmem:[#allocation8] sm:$0xff] }
 0x503   : > { %v2256_v61 = vrot.slane %v2242_v12, 2  ;;  %v2270_v47 = vsel %vm455_vm4, %v2267_v42, %v2247_v40  ;;  %v2273_v48 = vsel %vm593_vm7, %v2247_v40, %v2261_v41  ;;  %v2257_v38 = vrot.slane %v2247_v40, 2  ;;  %2672 = vmatpush.bf16.msrb.mxu0 %v4552_v26 }
 0x504   : > { %v2276_v49 = vpack.c.bf16 %v2273_v48, %v2270_v47  ;;  %2646 = vmatpush.bf16.msra.mxu2 %v3605_v32  ;;  %2760 = vmatpush.bf16.msrb.mxu1 %v3605_v32 }
 0x505   : > { %v2271_v8 = vsel %vm455_vm4, %v2268_v50, %v2256_v61  ;;  %v2274_v53 = vsel %vm593_vm7, %v2256_v61, %v2235_v39  ;;  %v2272_v55 = vsel %vm455_vm4, %v2269_v51, %v2257_v38  ;;  %v2275_v46 = vsel %vm593_vm7, %v2257_v38, %v3376_v45  ;;  %v4556_v39 = vld [vmem:[#allocation8 + $0x40] sm:$0xff] }
 0x506   : > { %2287 = vmatmul.bf16.vlgmr.msra.gmra.mxu3 %v2276_v49  ;;  %v2277_v56 = vpack.c.bf16 %v2274_v53, %v2271_v8  ;;  %v2278_v58 = vpack.c.bf16 %v2275_v46, %v2272_v55 }
 0x507   : > { %2659 = vmatpush.bf16.msrb.mxu3 %v4556_v39 }
 0x508   : > { %2301 = vmatmul.bf16.vlgmr.msra.gmra.mxu0 %v2277_v56  ;;  %2315 = vmatmul.bf16.vlgmr.msra.gmra.mxu1 %v2278_v58 }
 0x509   : > { %2766 = vmatpush.bf16.msrb.mxu2 %v4509_v63 }
 0x50b   : > { %2779 = vmatpush.bf16.msra.mxu3 %v4506_v60 }
 0x50d   : > { %2767 = vmatpush.bf16.msrb.mxu2 %v4515_v5 }
 0x50f   : > { %2780 = vmatpush.bf16.msra.mxu3 %v4512_v3 }
 0x511   : > { %2768 = vmatpush.bf16.msrb.mxu2 %v4521_v44 }
 0x513   : > { %2781 = vmatpush.bf16.msra.mxu3 %v4518_v6 }
 0x515   : > { %2769 = vmatpush.bf16.msrb.mxu2 %v4526_v57 }
 0x517   : > { %2782 = vmatpush.bf16.msra.mxu3 %v4524_v11 }
 0x519   : > { %2770 = vmatpush.bf16.msrb.mxu2 %v4532_v17 }
 0x51b   : > { %2783 = vmatpush.bf16.msra.mxu3 %v4529_v13 }
 0x51d   : > { %2771 = vmatpush.bf16.msrb.mxu2 %v4539_v29 }
 0x51f   : > { %2784 = vmatpush.bf16.msra.mxu3 %v4536_v59 }
 0x521   : > { %2772 = vmatpush.bf16.msrb.mxu2 %v4546_v31 }
 0x523   : > { %2785 = vmatpush.bf16.msra.mxu3 %v4542_v37 }
 0x525   : > { %2773 = vmatpush.bf16.msrb.mxu2 %v4556_v39 }
 0x527   : > { %2786 = vmatpush.bf16.msra.mxu3 %v4552_v26 }
 0x585   : > { %v2302_v21 = vpop.f32.mrf.mxu0  ;;  %v2316_v24 = vpop.f32.mrf.mxu1 }
 0x589   : > { %v2288_v18 = vpop.f32.mrf.mxu3 }
 0x58a   : > { %v2289_v22 = vadd.f32 %v4484_v0, %v2288_v18 }
 0x58c   : > { %v2303_v1 = vadd.f32 %v2302_v21, %v2289_v22 }
 0x58d   : > { %v2318_v41 = vpop.f32.mrf.mxu1 }
 0x58e   : > { %v2317_v7 = vadd.f32 %v2316_v24, %v2303_v1 }
 0x590   : > { %v2322_v9 = vrot.slane %v2317_v7, 3  ;;  %v2331_v2 = vadd.f32 %v2317_v7, %v4442_v27  ;;  %v2304_v27 = vpop.f32.mrf.mxu0  ;;  %v2325_v42 = vrot.slane %v2317_v7, 6 }
 0x591   : > { %v2290_v33 = vpop.f32.mrf.mxu3 }
 0x592   : > { %v2332_v16 = vadd.f32 %v2322_v9, %v4438_v23  ;;  %v2335_v14 = vsel %vm1706_vm12, %v2331_v2, 0.0  ;;  %v2291_v19 = vadd.f32 %v4484_v0, %v2290_v33 }
 0x593   : > { %v2343_v35 = vrot.slane %v2335_v14, 1  ;;  %v2355_v40 = vrot.slane %v2335_v14, 2 }
 0x594   : > { %v2336_v36 = vsel %vm1706_vm12, %v2332_v16, 0.0  ;;  %v2305_v34 = vadd.f32 %v2304_v27, %v2291_v19 }
 0x595   : > { %v2344_v23 = vrot.slane %v2336_v36, 1  ;;  %v2351_v12 = vmax.f32 %v2335_v14, %v2343_v35  ;;  %v2356_v52 = vrot.slane %v2336_v36, 2 }
 0x596   : > { %v2319_v0 = vadd.f32 %v2318_v41, %v2305_v34 }
 0x597   : > { %v2352_v43 = vmax.f32 %v2336_v36, %v2344_v23  ;;  %v2363_v45 = vmax.f32 %v2351_v12, %v2355_v40 }
 0x598   : > { %v2326_v61 = vrot.slane %v2319_v0, 6  ;;  %v2329_v47 = vrot.slane %v2319_v0, 1  ;;  %v3636_v0 = vld [vmem:[#allocation9 + $0x38] sm:$0xff] }
 0x599   : > { %v2364_v48 = vmax.f32 %v2352_v43, %v2356_v52  ;;  %2367 = vst [vmem:[#allocation2] sm:$0x3] %v2363_v45  ;;  %2884 = vmatpush.bf16.msra.mxu0 %v3636_v0  ;;  %v3635_v52 = vld [vmem:[#allocation9 + $0x30] sm:$0xff]  ;;  %v3634_v45 = vld [vmem:[#allocation9 + $0x28] sm:$0xff] }
 0x59a   : > { %v2327_v38 = vsel %vm553_vm6, %v2325_v42, %v2326_v61  ;;  %v2334_v49 = vadd.f32 %v2329_v47, %v4461_v25  ;;  %v4613_v42 = vld [vmem:[%s4682_s4] ss:$0 sm:$0xff] }
 0x59b   : > { %2368 = vst [vmem:[#allocation2 + $0x10] sm:$0x3] %v2364_v48  ;;  %v2333_v50 = vadd.f32 %v2327_v38, %v4449_v30 }
 0x59c   : > { %v2338_v51 = vsel %vm1706_vm12, %v2334_v49, 0.0 }
 0x59d   : > { %v2337_v8 = vsel %vm1706_vm12, %v2333_v50, 0.0  ;;  %v2346_v53 = vrot.slane %v2338_v51, 1  ;;  %v2358_v56 = vrot.slane %v2338_v51, 2  ;;  %2885 = vmatpush.bf16.msra.mxu0 %v3635_v52 }
 0x59e   : > { %v2345_v55 = vrot.slane %v2337_v8, 1  ;;  %v2357_v60 = vrot.slane %v2337_v8, 2 }
 0x59f   : > { %v2354_v46 = vmax.f32 %v2338_v51, %v2346_v53 }
 0x5a0   : > { %v2353_v58 = vmax.f32 %v2337_v8, %v2345_v55  ;;  %v4569_v62 = vld [vmem:[#allocation2] ss:$2 sm:$0x1] }
 0x5a1   : > { %v2366_v25 = vmax.f32 %v2354_v46, %v2358_v56  ;;  %v2375_v63 = vmax.f32 %v4569_v62, 0.0  ;;  %2886 = vmatpush.bf16.msra.mxu0 %v3634_v45 }
 0x5a2   : > { %v2365_v30 = vmax.f32 %v2353_v58, %v2357_v60  ;;  %v4574_v4 = vld [vmem:[#allocation2 + $0x10] ss:$2 sm:$0x1] }
 0x5a3   : > { %2370 = vst [vmem:[#allocation2 + $0x30] sm:$0x3] %v2366_v25  ;;  %v2376_v3 = vmax.f32 %v4574_v4, 0.0  ;;  %v2383_v5 = vrot.slane %v2375_v63, 7 }
 0x5a4   : > { %2369 = vst [vmem:[#allocation2 + $0x20] sm:$0x3] %v2365_v30 }
 0x5a5   : > { %v2384_v10 = vrot.slane %v2376_v3, 7  ;;  %v2391_v15 = vsel %vm593_vm7, 0.0, %v2383_v5 }
 0x5a6   : > { %v2395_v57 = vsel %vm553_vm6, %v2391_v15, 0.0 }
 0x5a7   : > { %v2392_v54 = vsel %vm593_vm7, 0.0, %v2384_v10  ;;  %v2403_v13 = vrot.slane %v2395_v57, 1  ;;  %v2408_v28 = vrot.slane %v2395_v57, 2 }
 0x5a8   : > { %v2396_v44 = vsel %vm553_vm6, %v2392_v54, 0.0 }
 0x5a9   : > { %v3378_v24 = vrot.slane %v2396_v44, 9  ;;  %v2413_v7 = vrot.slane %v2396_v44, 7  ;;  %v2432_v19 = vsel %vm593_vm7, %v2403_v13, %v2396_v44 }
 0x5aa   : > { %v4583_v6 = vld [vmem:[#allocation2 + $0x30] ss:$2 sm:$0x1] }
 0x5ab   : > { %v4586_v21 = vld [vmem:[#allocation2 + $0x20] ss:$2 sm:$0x1]  ;;  %v2378_v18 = vmax.f32 %v4583_v6, 0.0  ;;  %v2433_v16 = vsel %vm593_vm7, %v2408_v28, %v3378_v24  ;;  %v2431_v36 = vsel %vm593_vm7, %v2395_v57, %v2413_v7 }
 0x5ac   : > { %v2377_v11 = vmax.f32 %v4586_v21, 0.0 }
 0x5ad   : > { %v2386_v22 = vrot.slane %v2378_v18, 7 }
 0x5ae   : > { %v2385_v17 = vrot.slane %v2377_v11, 7 }
 0x5af   : > { %v2394_v1 = vsel %vm593_vm7, 0.0, %v2386_v22 }
 0x5b0   : > { %v2393_v9 = vsel %vm593_vm7, 0.0, %v2385_v17  ;;  %v2398_v2 = vsel %vm553_vm6, %v2394_v1, 0.0 }
 0x5b1   : > { %v2397_v20 = vsel %vm553_vm6, %v2393_v9, 0.0  ;;  %v3382_v33 = vrot.slane %v2398_v2, 7  ;;  %v2425_v27 = vrot.slane %v2398_v2, 5  ;;  %v3381_v34 = vrot.slane %v2398_v2, 6 }
 0x5b2   : > { %v2436_v59 = vsel %vm553_vm6, %v2433_v16, %v2397_v20  ;;  %v2419_v29 = vrot.slane %v2397_v20, 6  ;;  %v3379_v14 = vrot.slane %v2397_v20, 7 }
 0x5b3   : > { %v2439_v35 = vsel %vm1706_vm12, %v2436_v59, %v3382_v33 }
 0x5b4   : > { %v2442_v32 = vpack.c.bf16 %v2439_v35, %v2439_v35  ;;  %v2434_v23 = vsel %vm553_vm6, %v2431_v36, %v2419_v29  ;;  %v2435_v12 = vsel %vm553_vm6, %v2432_v19, %v3379_v14 }
 0x5b5   : > { %v2437_v31 = vsel %vm1706_vm12, %v2434_v23, %v2425_v27  ;;  %v2438_v37 = vsel %vm1706_vm12, %v2435_v12, %v3381_v34  ;;  %v3632_v23 = vld [vmem:[#allocation9 + $0x18] sm:$0xff]  ;;  %v3631_v12 = vld [vmem:[#allocation9 + $0x10] sm:$0xff] }
 0x5b6   : > { %2673 = vmatmul.bf16.vlgmr.msrb.gmra.mxu0 %v2442_v32  ;;  %v2440_v40 = vpack.c.bf16 %v2437_v31, %v2437_v31  ;;  %v2441_v41 = vpack.c.bf16 %v2438_v37, %v2438_v37  ;;  %v3633_v32 = vld [vmem:[#allocation9 + $0x20] sm:$0xff]  ;;  %v3630_v31 = vld [vmem:[#allocation9 + $0x8] sm:$0xff] }
 0x5b7   : > { %2887 = vmatpush.bf16.msra.mxu0 %v3633_v32  ;;  %v3629_v37 = vld [vmem:[#allocation9] sm:$0xff] }
 0x5b8   : > { %2647 = vmatmul.bf16.vlgmr.msra.gmra.mxu2 %v2440_v40  ;;  %2660 = vmatmul.bf16.vlgmr.msrb.gmra.mxu3 %v2441_v41 }
 0x5bb   : > { %2888 = vmatpush.bf16.msra.mxu0 %v3632_v23 }
 0x5bf   : > { %2889 = vmatpush.bf16.msra.mxu0 %v3631_v12 }
 0x5c3   : > { %2890 = vmatpush.bf16.msra.mxu0 %v3630_v31 }
 0x5c7   : > { %2891 = vmatpush.bf16.msra.mxu0 %v3629_v37 }
 0x633   : > { %v2674_v43 = vpop.f32.mrf.mxu0 }
 0x63b   : > { %v2648_v61 = vpop.f32.mrf.mxu2  ;;  %v2661_v39 = vpop.f32.mrf.mxu3 }
 0x63c   : > { %v2649_v26 = vadd.f32 %v4613_v42, %v2648_v61  ;;  %v2676_v47 = vpop.f32.mrf.mxu0 }
 0x63e   : > { %v2662_v48 = vadd.f32 %v2661_v39, %v2649_v26 }
 0x640   : > { %v2675_v38 = vadd.f32 %v2674_v43, %v2662_v48 }
 0x642   : > { %v2679_v49 = vrot.slane %v2675_v38, 1  ;;  %v2681_v50 = vrot.slane %v2675_v38, 2  ;;  %v2683_v51 = vrot.slane %v2675_v38, 3  ;;  %v2685_v8 = vmax.f32 %v2675_v38, 0.0 }
 0x643   : > { %v2650_v53 = vpop.f32.mrf.mxu2  ;;  %v2663_v55 = vpop.f32.mrf.mxu3 }
 0x644   : > { %v2686_v46 = vmax.f32 %v2679_v49, 0.0  ;;  %v2687_v56 = vmax.f32 %v2681_v50, 0.0  ;;  %v2688_v58 = vmax.f32 %v2683_v51, 0.0  ;;  %v2693_v60 = vrot.slane %v2685_v8, 7 }
 0x646   : > { %v2694_v25 = vrot.slane %v2686_v46, 7  ;;  %v2695_v63 = vrot.slane %v2687_v56, 7  ;;  %v2696_v30 = vrot.slane %v2688_v58, 7  ;;  %v2701_v3 = vsel %vm593_vm7, 0.0, %v2693_v60 }
 0x647   : > { %v2705_v5 = vsel %vm553_vm6, %v2701_v3, 0.0 }
 0x648   : > { %v2702_v10 = vsel %vm593_vm7, 0.0, %v2694_v25  ;;  %v2703_v54 = vsel %vm593_vm7, 0.0, %v2695_v63  ;;  %v2704_v15 = vsel %vm593_vm7, 0.0, %v2696_v30  ;;  %v2713_v44 = vrot.slane %v2705_v5, 1 }
 0x649   : > { %v2706_v18 = vsel %vm553_vm6, %v2702_v10, 0.0  ;;  %v2707_v57 = vsel %vm553_vm6, %v2703_v54, 0.0  ;;  %v2708_v11 = vsel %vm553_vm6, %v2704_v15, 0.0  ;;  %v2718_v22 = vrot.slane %v2705_v5, 2 }
 0x64a   : > { %v2723_v24 = vrot.slane %v2706_v18, 7  ;;  %v3480_v17 = vrot.slane %v2706_v18, 9  ;;  %v2729_v13 = vrot.slane %v2707_v57, 6  ;;  %v3481_v1 = vrot.slane %v2707_v57, 7 }
 0x64b   : > { %v3483_v28 = vrot.slane %v2708_v11, 6  ;;  %v2742_v7 = vsel %vm593_vm7, %v2713_v44, %v2706_v18  ;;  %v2735_v9 = vrot.slane %v2708_v11, 5  ;;  %v3484_v33 = vrot.slane %v2708_v11, 7 }
 0x64c   : > { %v2741_v2 = vsel %vm593_vm7, %v2705_v5, %v2723_v24  ;;  %v2745_v20 = vsel %vm553_vm6, %v2742_v7, %v3481_v1  ;;  %v2743_v16 = vsel %vm593_vm7, %v2718_v22, %v3480_v17 }
 0x64d   : > { %v2748_v59 = vsel %vm1706_vm12, %v2745_v20, %v3483_v28  ;;  %v2744_v29 = vsel %vm553_vm6, %v2741_v2, %v2729_v13  ;;  %v2746_v14 = vsel %vm553_vm6, %v2743_v16, %v2707_v57 }
 0x64e   : > { %v2751_v19 = vpack.c.bf16 %v2748_v59, %v2748_v59  ;;  %v2747_v35 = vsel %vm1706_vm12, %v2744_v29, %v2735_v9  ;;  %v2749_v27 = vsel %vm1706_vm12, %v2746_v14, %v3484_v33 }
 0x64f   : > { %v2750_v36 = vpack.c.bf16 %v2747_v35, %v2747_v35  ;;  %v2752_v34 = vpack.c.bf16 %v2749_v27, %v2749_v27 }
 0x650   : > { %2774 = vmatmul.bf16.vlgmr.msrb.gmra.mxu2 %v2751_v19 }
 0x651   : > { %2761 = vmatmul.bf16.vlgmr.msrb.gmra.mxu1 %v2750_v36  ;;  %2787 = vmatmul.bf16.vlgmr.msra.gmra.mxu3 %v2752_v34 }
 0x6ce   : > { %v2762_v40 = vpop.f32.mrf.mxu1 }
 0x6cf   : > { %v2763_v41 = vadd.f32 %v4613_v42, %v2762_v40 }
 0x6d3   : > { %v2775_v0 = vpop.f32.mrf.mxu2 }
 0x6d4   : > { %v2776_v43 = vadd.f32 %v2775_v0, %v2763_v41  ;;  %v2788_v52 = vpop.f32.mrf.mxu3 }
 0x6d6   : > { %v2789_v45 = vadd.f32 %v2788_v52, %v2776_v43  ;;  %v2764_v61 = vpop.f32.mrf.mxu1 }
 0x6d8   : > { %v2793_v39 = vrot.slane %v2789_v45, 1  ;;  %v2795_v26 = vrot.slane %v2789_v45, 2  ;;  %v2797_v47 = vrot.slane %v2789_v45, 3  ;;  %v2799_v51 = vadd.f32 %v2789_v45, %v4569_v62  ;;  %v3725_v62 = vld [vmem:[%s4684_s6] ss:$0 sm:$0xff] }
 0x6da   : > { %v2800_v48 = vadd.f32 %v2793_v39, %v4574_v4  ;;  %v2801_v38 = vadd.f32 %v2795_v26, %v4586_v21  ;;  %v2802_v49 = vadd.f32 %v2797_v47, %v4583_v6 }
 0x6db   : > { %v2777_v50 = vpop.f32.mrf.mxu2 }
 0x6dc   : > { %v2804_v42 = vrot.slane %v2800_v48, 7  ;;  %v2807_v8 = vrot.slane %v2801_v38, 6  ;;  %v2790_v53 = vpop.f32.mrf.mxu3  ;;  %v2810_v55 = vrot.slane %v2802_v49, 5 }
 0x6de   : > { %v2812_v46 = vsel %vm593_vm7, %v2799_v51, %v2804_v42 }
 0x6df   : > { %v2813_v56 = vsel %vm553_vm6, %v2812_v46, %v2807_v8 }
 0x6e0   : > { %v2814_v58 = vsel %vm1706_vm12, %v2813_v56, %v2810_v55 }
 0x6e1   : > { %v2815_v60 = vpack.c.bf16 %v2814_v58, %v2814_v58 }
 0x6e3   : > { %2892 = vmatmul.bf16.vlgmr.msra.gmra.mxu0 %v2815_v60 }
 0x760   : > { %v2893_v4 = vpop.f32.mrf.mxu0 }
 0x761   : > { %v2894_v6 = vadd.f32 %v3725_v62, %v2893_v4 }
 0x763   : > { %2897 = vst [vmem:[%s349_s16] sm:$0xf] %v2894_v6 }
 0x764   : > { %3873 = shalt.err (!%p3870_p10)
}
 0x765   : > { %3651 = dma.vmem_to_hbm [thread:$0]  (%p4062_p3), %s2912_s22, 64, %s2914_s29, %s2899_s9  }
 0x768   : > { %v2895_v21 = vpop.f32.mrf.mxu0 }
 0x769 PF: > { %s2925_s15 = sand.u32 1, %s3908_s24   ;;  %p4700_p12 = scmp.ge.s32.totalorder %s3920_s27, 2 }
 0x76a   : > { %s2926_s12 = scalar_lea.sflag [#allocation5], %s2925_s15 }
 0x76b   : > { %p3668_p13 = pnand %p4700_p12, %p4006_p6 }
 0x76d   : > { %p3669_p0 = pneg %p3668_p13 }
 0x76f   : > { %3903 = dma.done.wait (%p3669_p0), %s2926_s12, 64  }
 0x770   : > { %3905 = vsyncadd (%p3669_p0), %s2926_s12, 4294967232  ;;  %p22_p5 = scmp.ge.s32.totalorder %s4044_s13, 4   ;;  %s4701_s24 = smov %s3912_s25 }
 0x771   : > { %s4702_s25 = smov %s3916_s26  ;;  %s4703_s26 = smov %s4058_s17 }
 0x772   : > { %s4704_s27 = smov %s4044_s13  ;;  %24 = sbr.rel (!%p22_p5) target bundleno = 9 (0x9), region = 108 }
 0x777   :  { %2932 = vsyncpa [#allocation4], 1 }
 0x778   :  { %2934 = vsyncpa [#allocation4 + $0x1], 1 }
 0x779   :  { %2935 = vsyncpa [#allocation7], 1 }
 0x77a   :  { %2936 = vsyncpa [#allocation10], 1 }
 0x77b   :  { %2937 = vsyncpa [#allocation5], 1 }
 0x77c   :  { %2939 = vsyncpa [#allocation5 + $0x1], 1 }

</bundles_post_ra>
